<compile_context>
chip_gen: v5e
topology: v5e:2x2
jax: 0.10.0
libtpu: 0.0.40
codegen_flags: <defaults>
</compile_context>

<pallas_src>
import functools

import numpy as np
import jax
import jax.numpy as jnp
from jax.experimental import pallas as pl
from jax.experimental.pallas import tpu as pltpu


# ----------------------------------------------------------------------------
# Fused Block kernel: one grid step == one image, everything stays in VMEM.
# ----------------------------------------------------------------------------
def _block_kernel(x_ref, a1_ref, a2_ref, ad_ref, au_ref,
                  b1_ref, b2_ref, bd_ref, bu_ref,
                  o_ref, pad_full, pad_half, pad_up, *, H, W, C):
    Hd = H // 2
    LC = W * C           # full-res lane width
    LH = (W // 2) * C    # half-res lane width

    # Zero only the 1-row halos (interiors are fully overwritten every step).
    # Done unconditionally so it stays correct when the "parallel" grid is
    # sharded across TensorCores (a core may never run program_id == 0).
    pad_full[0:1, :] = jnp.zeros((1, LC), pad_full.dtype)
    pad_full[H + 1:H + 2, :] = jnp.zeros((1, LC), pad_full.dtype)
    pad_half[0:1, :] = jnp.zeros((1, LC), pad_half.dtype)
    pad_half[Hd + 1:Hd + 2, :] = jnp.zeros((1, LC), pad_half.dtype)
    pad_up[0:1, :] = jnp.zeros((1, LH), pad_up.dtype)
    pad_up[H + 1:H + 2, :] = jnp.zeros((1, LH), pad_up.dtype)

    def conv_rows(pad_ref, rows, ops_ref, bias_ref):
        """3x3 conv as 3 row(dy)-shifted banded matmuls: sum_dy pad[dy:dy+rows] @ ops[dy]."""
        acc = jnp.dot(pad_ref[0:rows, :], ops_ref[0],
                      preferred_element_type=jnp.float32)
        acc = acc + jnp.dot(pad_ref[1:rows + 1, :], ops_ref[1],
                            preferred_element_type=jnp.float32)
        acc = acc + jnp.dot(pad_ref[2:rows + 2, :], ops_ref[2],
                            preferred_element_type=jnp.float32)
        return acc + bias_ref[...]

    x = x_ref[0]                                                   # (H, W*C) f32

    # ---- res = relu(conv1(x)) + x ----
    pad_full[1:H + 1, :] = x.astype(pad_full.dtype)
    res = jnp.maximum(conv_rows(pad_full, H, a1_ref, b1_ref), 0.0) + x

    # ---- res2 = conv2(res) ----
    pad_full[1:H + 1, :] = res.astype(pad_full.dtype)
    res2 = conv_rows(pad_full, H, a2_ref, b2_ref)

    # ---- unetBlock: avgpool/2 -> conv3x3+ReLU -> nearest x2 -> conv3x3 -> +skip ----
    # Row half of the 2x2 avg-pool on the VPU (small static unroll); the column
    # half (0.5 factor + column mixing) is folded into the down-conv operator.
    for m in range(Hd):
        pr = 0.5 * (res2[2 * m:2 * m + 1, :] + res2[2 * m + 1:2 * m + 2, :])
        pad_half[1 + m:2 + m, :] = pr.astype(pad_half.dtype)
    dwn = jnp.maximum(conv_rows(pad_half, Hd, ad_ref, bd_ref), 0.0)  # (Hd, Wd*C)

    # Nearest-2x row upsample: duplicate each half-res row into the padded
    # up-conv operand (column upsample is folded into the up-conv operator).
    dwn_b = dwn.astype(pad_up.dtype)
    for m in range(Hd):                        # static unroll: 2*Hd tiny row stores
        row = dwn_b[m:m + 1, :]
        pad_up[1 + 2 * m:2 + 2 * m, :] = row
        pad_up[2 + 2 * m:3 + 2 * m, :] = row
    u = conv_rows(pad_up, H, au_ref, bu_ref)                         # (H, W*C)

    # ublock skip (+res2) and outer residual (+x).
    o_ref[...] = ((u + res2 + x)[None]).astype(o_ref.dtype)


# ----------------------------------------------------------------------------
# Wrapper-side construction of the banded conv operators (static selectors).
# ----------------------------------------------------------------------------
def _sel_full(W):
    """S[d, w_in, w_out] = 1 iff w_in == w_out + d - 1 (plain 3x3 conv band)."""
    S = np.zeros((3, W, W), np.float32)
    for d in range(3):
        for wo in range(W):
            wi = wo + d - 1
            if 0 <= wi < W:
                S[d, wi, wo] = 1.0
    return S


def _sel_pool(W):
    """Down conv operand = row-pooled full-width rows; fold the 0.5 column-pool."""
    Wd = W // 2
    S = np.zeros((3, W, Wd), np.float32)
    for d in range(3):
        for wo in range(Wd):
            wi = wo + d - 1                     # column in the pooled image
            if 0 <= wi < Wd:
                S[d, 2 * wi, wo] = 0.5
                S[d, 2 * wi + 1, wo] = 0.5
    return S


def _sel_up(W):
    """Up conv operand = row-upsampled half-width rows; fold the column nearest-up."""
    Wd = W // 2
    S = np.zeros((3, Wd, W), np.float32)
    for d in range(3):
        for wo in range(W):
            wi = wo + d - 1                     # full-res input column of this tap
            if 0 <= wi < W:
                S[d, wi // 2, wo] += 1.0
    return S


def _banded(wgt, S):
    """wgt: (3,3,Ci,Co) HWIO; S: (3,P,Q) static selector -> (3, P*Ci, Q*Co) bf16."""
    A = jnp.einsum('dpq,ydio->ypiqo', jnp.asarray(S), wgt)
    P, Q = S.shape[1], S.shape[2]
    Ci, Co = wgt.shape[2], wgt.shape[3]
    return A.reshape(3, P * Ci, Q * Co).astype(jnp.bfloat16)


def _rep_spec(shape):
    nd = len(shape)
    return pl.BlockSpec(shape, lambda b: (0,) * nd)


def block_forward(x, p):
    """x: (B, H, W, C) NHWC, H and W even. Whole Block in one fused pallas_call."""
    B, H, W, C = x.shape
    assert H % 2 == 0 and W % 2 == 0
    Hd = H // 2
    LC = W * C          # 16*8 = 128 -> lane-dense rows
    LH = (W // 2) * C   # 64

    a1 = _banded(p["w1"], _sel_full(W))         # (3, LC, LC)
    a2 = _banded(p["w2"], _sel_full(W))         # (3, LC, LC)
    ad = _banded(p["wd"], _sel_pool(W))         # (3, LC, LH)  column-pool folded in
    au = _banded(p["wu"], _sel_up(W))           # (3, LH, LC)  column-upsample folded in

    b1 = jnp.tile(p["b1"], W).reshape(1, LC)
    b2 = jnp.tile(p["b2"], W).reshape(1, LC)
    bd = jnp.tile(p["bd"], W // 2).reshape(1, LH)
    bu = jnp.tile(p["bu"], W).reshape(1, LC)

    flops = B * 2 * 3 * (2 * H * LC * LC + Hd * LC * LH + H * LH * LC)
    bytes_accessed = (2 * B * H * LC) * 4 \
        + (a1.size + a2.size + ad.size + au.size) * 2 \
        + (b1.size + b2.size + bd.size + bu.size) * 4

    kernel = functools.partial(_block_kernel, H=H, W=W, C=C)
    out = pl.pallas_call(
        kernel,
        out_shape=jax.ShapeDtypeStruct((B, H, LC), x.dtype),
        grid=(B,),
        in_specs=[
            pl.BlockSpec((1, H, LC), lambda b: (b, 0, 0)),   # x (lane-dense rows)
            _rep_spec((3, LC, LC)),                          # conv1 banded ops
            _rep_spec((3, LC, LC)),                          # conv2 banded ops
            _rep_spec((3, LC, LH)),                          # ublock down-conv ops
            _rep_spec((3, LH, LC)),                          # ublock up-conv ops
            _rep_spec((1, LC)), _rep_spec((1, LC)),          # b1, b2 (lane-tiled)
            _rep_spec((1, LH)), _rep_spec((1, LC)),          # bd, bu (lane-tiled)
        ],
        out_specs=pl.BlockSpec((1, H, LC), lambda b: (b, 0, 0)),
        scratch_shapes=[
            pltpu.VMEM((H + 2, LC), jnp.bfloat16),   # row-padded full-res operand
            pltpu.VMEM((Hd + 2, LC), jnp.bfloat16),  # row-padded row-pooled operand
            pltpu.VMEM((H + 2, LH), jnp.bfloat16),   # row-padded row-upsampled operand
        ],
        compiler_params=pltpu.CompilerParams(
            dimension_semantics=("parallel",)),      # one image per TensorCore on v7x
        cost_estimate=pl.CostEstimate(flops=flops, transcendentals=0,
                                      bytes_accessed=bytes_accessed),
    )(x.reshape(B, H, LC), a1, a2, ad, au, b1, b2, bd, bu)
    return out.reshape(B, H, W, C)


# ----------------------------------------------------------------------------
# Pure-JAX reference (ground truth, full f32 / HIGHEST precision)
# ----------------------------------------------------------------------------
def _conv3x3_ref(x, w, b):
    y = jax.lax.conv_general_dilated(
        x, w, window_strides=(1, 1), padding="SAME",
        dimension_numbers=("NHWC", "HWIO", "NHWC"),
        precision=jax.lax.Precision.HIGHEST)
    return y + b[None, None, None, :]


def _avg_pool2(x):
    return 0.25 * (x[:, 0::2, 0::2, :] + x[:, 0::2, 1::2, :]
                   + x[:, 1::2, 0::2, :] + x[:, 1::2, 1::2, :])


def _nearest_up2(x):
    return jnp.repeat(jnp.repeat(x, 2, axis=1), 2, axis=2)


def block_forward_ref(x, p):
    res = jnp.maximum(_conv3x3_ref(x, p["w1"], p["b1"]), 0.0) + x
    res = _conv3x3_ref(res, p["w2"], p["b2"])
    d = _avg_pool2(res)
    d = jnp.maximum(_conv3x3_ref(d, p["wd"], p["bd"]), 0.0)
    u = _nearest_up2(d)
    return _conv3x3_ref(u, p["wu"], p["bu"]) + res + x


def init_params(key, C):
    ks = jax.random.split(key, 8)
    w = lambda k: 0.1 * jax.random.normal(k, (3, 3, C, C), jnp.float32)
    b = lambda k: 0.05 * jax.random.normal(k, (C,), jnp.float32)
    return {
        "w1": w(ks[0]), "b1": b(ks[1]),
        "w2": w(ks[2]), "b2": b(ks[3]),
        "wd": w(ks[4]), "bd": b(ks[5]),   # unetBlock down conv
        "wu": w(ks[6]), "bu": b(ks[7]),   # unetBlock up conv
    }


if __name__ == "__main__":
    B, C, H, W = 2, 8, 16, 16                    # dim=8, kernel_size=3
    key = jax.random.PRNGKey(0)
    kx, kp = jax.random.split(key)

    # PyTorch-style NCHW input, transposed to the kernel's NHWC layout.
    x_nchw = jax.random.normal(kx, (B, C, H, W), jnp.float32)
    x = jnp.transpose(x_nchw, (0, 2, 3, 1))

    params = init_params(kp, C)

    out = jax.block_until_ready(jax.jit(block_forward)(x, params))
    ref = block_forward_ref(x, params)

    assert out.shape == (B, H, W, C)
    err = float(jnp.max(jnp.abs(out - ref)))
    # Kernel matmuls run single-pass bf16 on the MXU (f32 accumulate); the
    # reference is full-f32 HIGHEST, hence the loose tolerance.
    assert jnp.allclose(out, ref, atol=3e-2, rtol=3e-2), err
    print("KERNEL_OK")
</pallas_src>

<mosaic_0001>
module attributes {stable_mosaic.version = 11 : i64} {
  func.func @_block_kernel(%arg0: i32, %arg1: memref<1x16x128xf32, #tpu.memory_space<vmem>>, %arg2: memref<3x128x128xbf16, #tpu.memory_space<vmem>>, %arg3: memref<3x128x128xbf16, #tpu.memory_space<vmem>>, %arg4: memref<3x128x64xbf16, #tpu.memory_space<vmem>>, %arg5: memref<3x64x128xbf16, #tpu.memory_space<vmem>>, %arg6: memref<1x128xf32, #tpu.memory_space<vmem>>, %arg7: memref<1x128xf32, #tpu.memory_space<vmem>>, %arg8: memref<1x64xf32, #tpu.memory_space<vmem>>, %arg9: memref<1x128xf32, #tpu.memory_space<vmem>>, %arg10: memref<1x16x128xf32, #tpu.memory_space<vmem>>, %arg11: memref<18x128xbf16, #tpu.memory_space<vmem>>, %arg12: memref<10x128xbf16, #tpu.memory_space<vmem>>, %arg13: memref<18x64xbf16, #tpu.memory_space<vmem>>) attributes {dimension_semantics = [#tpu.dimension_semantics<parallel>], iteration_bounds = array<i64: 2>, scalar_prefetch = 0 : i64, scratch_operands = 3 : i64, tpu.core_type = #tpu.core_type<tc>, window_params = [{transform_indices = @transform_0, window_bounds = array<i64: 1, 16, 128>}, {pipeline_mode = #tpu.pipeline_mode<synchronous>, transform_indices = @transform_1, window_bounds = array<i64: 3, 128, 128>}, {pipeline_mode = #tpu.pipeline_mode<synchronous>, transform_indices = @transform_2, window_bounds = array<i64: 3, 128, 128>}, {pipeline_mode = #tpu.pipeline_mode<synchronous>, transform_indices = @transform_3, window_bounds = array<i64: 3, 128, 64>}, {pipeline_mode = #tpu.pipeline_mode<synchronous>, transform_indices = @transform_4, window_bounds = array<i64: 3, 64, 128>}, {pipeline_mode = #tpu.pipeline_mode<synchronous>, transform_indices = @transform_5, window_bounds = array<i64: 1, 128>}, {pipeline_mode = #tpu.pipeline_mode<synchronous>, transform_indices = @transform_6, window_bounds = array<i64: 1, 128>}, {pipeline_mode = #tpu.pipeline_mode<synchronous>, transform_indices = @transform_7, window_bounds = array<i64: 1, 64>}, {pipeline_mode = #tpu.pipeline_mode<synchronous>, transform_indices = @transform_8, window_bounds = array<i64: 1, 128>}, {transform_indices = @transform_9, window_bounds = array<i64: 1, 16, 128>}]} {
    %cst = arith.constant 0.000000e+00 : bf16
    %0 = vector.broadcast %cst : bf16 to vector<1x128xbf16>
    %c0 = arith.constant 0 : index
    %c0_0 = arith.constant 0 : index
    %1 = vector.load %arg11[%c0, %c0_0] : memref<18x128xbf16, #tpu.memory_space<vmem>>, vector<1x128xbf16>
    tpu.vector_store %arg11[%c0, %c0_0], %0 {strides = array<i32>} : memref<18x128xbf16, #tpu.memory_space<vmem>>, vector<1x128xbf16>,
    %cst_1 = arith.constant 0.000000e+00 : bf16
    %2 = vector.broadcast %cst_1 : bf16 to vector<1x128xbf16>
    %c17 = arith.constant 17 : index
    %c0_2 = arith.constant 0 : index
    %3 = vector.load %arg11[%c17, %c0_2] : memref<18x128xbf16, #tpu.memory_space<vmem>>, vector<1x128xbf16>
    tpu.vector_store %arg11[%c17, %c0_2], %2 {strides = array<i32>} : memref<18x128xbf16, #tpu.memory_space<vmem>>, vector<1x128xbf16>,
    %cst_3 = arith.constant 0.000000e+00 : bf16
    %4 = vector.broadcast %cst_3 : bf16 to vector<1x128xbf16>
    %c0_4 = arith.constant 0 : index
    %c0_5 = arith.constant 0 : index
    %5 = vector.load %arg12[%c0_4, %c0_5] : memref<10x128xbf16, #tpu.memory_space<vmem>>, vector<1x128xbf16>
    tpu.vector_store %arg12[%c0_4, %c0_5], %4 {strides = array<i32>} : memref<10x128xbf16, #tpu.memory_space<vmem>>, vector<1x128xbf16>,
    %cst_6 = arith.constant 0.000000e+00 : bf16
    %6 = vector.broadcast %cst_6 : bf16 to vector<1x128xbf16>
    %c9 = arith.constant 9 : index
    %c0_7 = arith.constant 0 : index
    %7 = vector.load %arg12[%c9, %c0_7] : memref<10x128xbf16, #tpu.memory_space<vmem>>, vector<1x128xbf16>
    tpu.vector_store %arg12[%c9, %c0_7], %6 {strides = array<i32>} : memref<10x128xbf16, #tpu.memory_space<vmem>>, vector<1x128xbf16>,
    %cst_8 = arith.constant 0.000000e+00 : bf16
    %8 = vector.broadcast %cst_8 : bf16 to vector<1x64xbf16>
    %c0_9 = arith.constant 0 : index
    %c0_10 = arith.constant 0 : index
    %9 = vector.load %arg13[%c0_9, %c0_10] : memref<18x64xbf16, #tpu.memory_space<vmem>>, vector<1x64xbf16>
    tpu.vector_store %arg13[%c0_9, %c0_10], %8 {strides = array<i32>} : memref<18x64xbf16, #tpu.memory_space<vmem>>, vector<1x64xbf16>,
    %cst_11 = arith.constant 0.000000e+00 : bf16
    %10 = vector.broadcast %cst_11 : bf16 to vector<1x64xbf16>
    %c17_12 = arith.constant 17 : index
    %c0_13 = arith.constant 0 : index
    %11 = vector.load %arg13[%c17_12, %c0_13] : memref<18x64xbf16, #tpu.memory_space<vmem>>, vector<1x64xbf16>
    tpu.vector_store %arg13[%c17_12, %c0_13], %10 {strides = array<i32>} : memref<18x64xbf16, #tpu.memory_space<vmem>>, vector<1x64xbf16>,
    %c0_14 = arith.constant 0 : index
    %c0_15 = arith.constant 0 : index
    %c0_16 = arith.constant 0 : index
    %12 = vector.load %arg1[%c0_14, %c0_15, %c0_16] : memref<1x16x128xf32, #tpu.memory_space<vmem>>, vector<1x16x128xf32>
    %13 = vector.shape_cast %12 : vector<1x16x128xf32> to vector<16x128xf32>
    %14 = arith.truncf %13 : vector<16x128xf32> to vector<16x128xbf16>
    %c1 = arith.constant 1 : index
    %c0_17 = arith.constant 0 : index
    %15 = vector.load %arg11[%c1, %c0_17] : memref<18x128xbf16, #tpu.memory_space<vmem>>, vector<16x128xbf16>
    tpu.vector_store %arg11[%c1, %c0_17], %14 {strides = array<i32>} : memref<18x128xbf16, #tpu.memory_space<vmem>>, vector<16x128xbf16>,
    %c0_18 = arith.constant 0 : index
    %c0_19 = arith.constant 0 : index
    %16 = vector.load %arg11[%c0_18, %c0_19] : memref<18x128xbf16, #tpu.memory_space<vmem>>, vector<16x128xbf16>
    %c0_20 = arith.constant 0 : index
    %c0_21 = arith.constant 0 : index
    %c0_22 = arith.constant 0 : index
    %17 = vector.load %arg2[%c0_20, %c0_21, %c0_22] : memref<3x128x128xbf16, #tpu.memory_space<vmem>>, vector<1x128x128xbf16>
    %18 = vector.shape_cast %17 : vector<1x128x128xbf16> to vector<128x128xbf16>
    %cst_23 = arith.constant dense<0.000000e+00> : vector<16x128xf32>
    %19 = tpu.matmul %16, %18, %cst_23 {dimension_numbers = #tpu.dot_dimension_numbers<[1], [0], [0], [1], [0, 0, 1, 1], [], []>} : vector<16x128xbf16>, vector<128x128xbf16>, vector<16x128xf32> -> vector<16x128xf32>
    %c1_24 = arith.constant 1 : index
    %c0_25 = arith.constant 0 : index
    %20 = vector.load %arg11[%c1_24, %c0_25] : memref<18x128xbf16, #tpu.memory_space<vmem>>, vector<16x128xbf16>
    %c1_26 = arith.constant 1 : index
    %c0_27 = arith.constant 0 : index
    %c0_28 = arith.constant 0 : index
    %21 = vector.load %arg2[%c1_26, %c0_27, %c0_28] : memref<3x128x128xbf16, #tpu.memory_space<vmem>>, vector<1x128x128xbf16>
    %22 = vector.shape_cast %21 : vector<1x128x128xbf16> to vector<128x128xbf16>
    %cst_29 = arith.constant dense<0.000000e+00> : vector<16x128xf32>
    %23 = tpu.matmul %20, %22, %cst_29 {dimension_numbers = #tpu.dot_dimension_numbers<[1], [0], [0], [1], [0, 0, 1, 1], [], []>} : vector<16x128xbf16>, vector<128x128xbf16>, vector<16x128xf32> -> vector<16x128xf32>
    %24 = arith.addf %19, %23 : vector<16x128xf32>
    %c2 = arith.constant 2 : index
    %c0_30 = arith.constant 0 : index
    %25 = vector.load %arg11[%c2, %c0_30] : memref<18x128xbf16, #tpu.memory_space<vmem>>, vector<16x128xbf16>
    %c2_31 = arith.constant 2 : index
    %c0_32 = arith.constant 0 : index
    %c0_33 = arith.constant 0 : index
    %26 = vector.load %arg2[%c2_31, %c0_32, %c0_33] : memref<3x128x128xbf16, #tpu.memory_space<vmem>>, vector<1x128x128xbf16>
    %27 = vector.shape_cast %26 : vector<1x128x128xbf16> to vector<128x128xbf16>
    %cst_34 = arith.constant dense<0.000000e+00> : vector<16x128xf32>
    %28 = tpu.matmul %25, %27, %cst_34 {dimension_numbers = #tpu.dot_dimension_numbers<[1], [0], [0], [1], [0, 0, 1, 1], [], []>} : vector<16x128xbf16>, vector<128x128xbf16>, vector<16x128xf32> -> vector<16x128xf32>
    %29 = arith.addf %24, %28 : vector<16x128xf32>
    %c0_35 = arith.constant 0 : index
    %c0_36 = arith.constant 0 : index
    %30 = vector.load %arg6[%c0_35, %c0_36] : memref<1x128xf32, #tpu.memory_space<vmem>>, vector<1x128xf32>
    %31 = vector.broadcast %30 : vector<1x128xf32> to vector<16x128xf32>
    %32 = arith.addf %29, %31 : vector<16x128xf32>
    %cst_37 = arith.constant 0.000000e+00 : f32
    %33 = vector.broadcast %cst_37 : f32 to vector<16x128xf32>
    %34 = arith.maximumf %32, %33 : vector<16x128xf32>
    %35 = arith.addf %34, %13 : vector<16x128xf32>
    %36 = arith.truncf %35 : vector<16x128xf32> to vector<16x128xbf16>
    %c1_38 = arith.constant 1 : index
    %c0_39 = arith.constant 0 : index
    %37 = vector.load %arg11[%c1_38, %c0_39] : memref<18x128xbf16, #tpu.memory_space<vmem>>, vector<16x128xbf16>
    tpu.vector_store %arg11[%c1_38, %c0_39], %36 {strides = array<i32>} : memref<18x128xbf16, #tpu.memory_space<vmem>>, vector<16x128xbf16>,
    %c0_40 = arith.constant 0 : index
    %c0_41 = arith.constant 0 : index
    %38 = vector.load %arg11[%c0_40, %c0_41] : memref<18x128xbf16, #tpu.memory_space<vmem>>, vector<16x128xbf16>
    %c0_42 = arith.constant 0 : index
    %c0_43 = arith.constant 0 : index
    %c0_44 = arith.constant 0 : index
    %39 = vector.load %arg3[%c0_42, %c0_43, %c0_44] : memref<3x128x128xbf16, #tpu.memory_space<vmem>>, vector<1x128x128xbf16>
    %40 = vector.shape_cast %39 : vector<1x128x128xbf16> to vector<128x128xbf16>
    %cst_45 = arith.constant dense<0.000000e+00> : vector<16x128xf32>
    %41 = tpu.matmul %38, %40, %cst_45 {dimension_numbers = #tpu.dot_dimension_numbers<[1], [0], [0], [1], [0, 0, 1, 1], [], []>} : vector<16x128xbf16>, vector<128x128xbf16>, vector<16x128xf32> -> vector<16x128xf32>
    %c1_46 = arith.constant 1 : index
    %c0_47 = arith.constant 0 : index
    %42 = vector.load %arg11[%c1_46, %c0_47] : memref<18x128xbf16, #tpu.memory_space<vmem>>, vector<16x128xbf16>
    %c1_48 = arith.constant 1 : index
    %c0_49 = arith.constant 0 : index
    %c0_50 = arith.constant 0 : index
    %43 = vector.load %arg3[%c1_48, %c0_49, %c0_50] : memref<3x128x128xbf16, #tpu.memory_space<vmem>>, vector<1x128x128xbf16>
    %44 = vector.shape_cast %43 : vector<1x128x128xbf16> to vector<128x128xbf16>
    %cst_51 = arith.constant dense<0.000000e+00> : vector<16x128xf32>
    %45 = tpu.matmul %42, %44, %cst_51 {dimension_numbers = #tpu.dot_dimension_numbers<[1], [0], [0], [1], [0, 0, 1, 1], [], []>} : vector<16x128xbf16>, vector<128x128xbf16>, vector<16x128xf32> -> vector<16x128xf32>
    %46 = arith.addf %41, %45 : vector<16x128xf32>
    %c2_52 = arith.constant 2 : index
    %c0_53 = arith.constant 0 : index
    %47 = vector.load %arg11[%c2_52, %c0_53] : memref<18x128xbf16, #tpu.memory_space<vmem>>, vector<16x128xbf16>
    %c2_54 = arith.constant 2 : index
    %c0_55 = arith.constant 0 : index
    %c0_56 = arith.constant 0 : index
    %48 = vector.load %arg3[%c2_54, %c0_55, %c0_56] : memref<3x128x128xbf16, #tpu.memory_space<vmem>>, vector<1x128x128xbf16>
    %49 = vector.shape_cast %48 : vector<1x128x128xbf16> to vector<128x128xbf16>
    %cst_57 = arith.constant dense<0.000000e+00> : vector<16x128xf32>
    %50 = tpu.matmul %47, %49, %cst_57 {dimension_numbers = #tpu.dot_dimension_numbers<[1], [0], [0], [1], [0, 0, 1, 1], [], []>} : vector<16x128xbf16>, vector<128x128xbf16>, vector<16x128xf32> -> vector<16x128xf32>
    %51 = arith.addf %46, %50 : vector<16x128xf32>
    %c0_58 = arith.constant 0 : index
    %c0_59 = arith.constant 0 : index
    %52 = vector.load %arg7[%c0_58, %c0_59] : memref<1x128xf32, #tpu.memory_space<vmem>>, vector<1x128xf32>
    %53 = vector.broadcast %52 : vector<1x128xf32> to vector<16x128xf32>
    %54 = arith.addf %51, %53 : vector<16x128xf32>
    %55 = vector.extract_strided_slice %54 {offsets = [0, 0], sizes = [1, 128], strides = [1, 1]} : vector<16x128xf32> to vector<1x128xf32>
    %56 = vector.extract_strided_slice %54 {offsets = [1, 0], sizes = [1, 128], strides = [1, 1]} : vector<16x128xf32> to vector<1x128xf32>
    %57 = arith.addf %55, %56 : vector<1x128xf32>
    %cst_60 = arith.constant 5.000000e-01 : f32
    %58 = vector.broadcast %cst_60 : f32 to vector<1x128xf32>
    %59 = arith.mulf %58, %57 : vector<1x128xf32>
    %60 = arith.truncf %59 : vector<1x128xf32> to vector<1x128xbf16>
    %c1_61 = arith.constant 1 : index
    %c0_62 = arith.constant 0 : index
    %61 = vector.load %arg12[%c1_61, %c0_62] : memref<10x128xbf16, #tpu.memory_space<vmem>>, vector<1x128xbf16>
    tpu.vector_store %arg12[%c1_61, %c0_62], %60 {strides = array<i32>} : memref<10x128xbf16, #tpu.memory_space<vmem>>, vector<1x128xbf16>,
    %62 = vector.extract_strided_slice %54 {offsets = [2, 0], sizes = [1, 128], strides = [1, 1]} : vector<16x128xf32> to vector<1x128xf32>
    %63 = vector.extract_strided_slice %54 {offsets = [3, 0], sizes = [1, 128], strides = [1, 1]} : vector<16x128xf32> to vector<1x128xf32>
    %64 = arith.addf %62, %63 : vector<1x128xf32>
    %cst_63 = arith.constant 5.000000e-01 : f32
    %65 = vector.broadcast %cst_63 : f32 to vector<1x128xf32>
    %66 = arith.mulf %65, %64 : vector<1x128xf32>
    %67 = arith.truncf %66 : vector<1x128xf32> to vector<1x128xbf16>
    %c2_64 = arith.constant 2 : index
    %c0_65 = arith.constant 0 : index
    %68 = vector.load %arg12[%c2_64, %c0_65] : memref<10x128xbf16, #tpu.memory_space<vmem>>, vector<1x128xbf16>
    tpu.vector_store %arg12[%c2_64, %c0_65], %67 {strides = array<i32>} : memref<10x128xbf16, #tpu.memory_space<vmem>>, vector<1x128xbf16>,
    %69 = vector.extract_strided_slice %54 {offsets = [4, 0], sizes = [1, 128], strides = [1, 1]} : vector<16x128xf32> to vector<1x128xf32>
    %70 = vector.extract_strided_slice %54 {offsets = [5, 0], sizes = [1, 128], strides = [1, 1]} : vector<16x128xf32> to vector<1x128xf32>
    %71 = arith.addf %69, %70 : vector<1x128xf32>
    %cst_66 = arith.constant 5.000000e-01 : f32
    %72 = vector.broadcast %cst_66 : f32 to vector<1x128xf32>
    %73 = arith.mulf %72, %71 : vector<1x128xf32>
    %74 = arith.truncf %73 : vector<1x128xf32> to vector<1x128xbf16>
    %c3 = arith.constant 3 : index
    %c0_67 = arith.constant 0 : index
    %75 = vector.load %arg12[%c3, %c0_67] : memref<10x128xbf16, #tpu.memory_space<vmem>>, vector<1x128xbf16>
    tpu.vector_store %arg12[%c3, %c0_67], %74 {strides = array<i32>} : memref<10x128xbf16, #tpu.memory_space<vmem>>, vector<1x128xbf16>,
    %76 = vector.extract_strided_slice %54 {offsets = [6, 0], sizes = [1, 128], strides = [1, 1]} : vector<16x128xf32> to vector<1x128xf32>
    %77 = vector.extract_strided_slice %54 {offsets = [7, 0], sizes = [1, 128], strides = [1, 1]} : vector<16x128xf32> to vector<1x128xf32>
    %78 = arith.addf %76, %77 : vector<1x128xf32>
    %cst_68 = arith.constant 5.000000e-01 : f32
    %79 = vector.broadcast %cst_68 : f32 to vector<1x128xf32>
    %80 = arith.mulf %79, %78 : vector<1x128xf32>
    %81 = arith.truncf %80 : vector<1x128xf32> to vector<1x128xbf16>
    %c4 = arith.constant 4 : index
    %c0_69 = arith.constant 0 : index
    %82 = vector.load %arg12[%c4, %c0_69] : memref<10x128xbf16, #tpu.memory_space<vmem>>, vector<1x128xbf16>
    tpu.vector_store %arg12[%c4, %c0_69], %81 {strides = array<i32>} : memref<10x128xbf16, #tpu.memory_space<vmem>>, vector<1x128xbf16>,
    %83 = vector.extract_strided_slice %54 {offsets = [8, 0], sizes = [1, 128], strides = [1, 1]} : vector<16x128xf32> to vector<1x128xf32>
    %84 = vector.extract_strided_slice %54 {offsets = [9, 0], sizes = [1, 128], strides = [1, 1]} : vector<16x128xf32> to vector<1x128xf32>
    %85 = arith.addf %83, %84 : vector<1x128xf32>
    %cst_70 = arith.constant 5.000000e-01 : f32
    %86 = vector.broadcast %cst_70 : f32 to vector<1x128xf32>
    %87 = arith.mulf %86, %85 : vector<1x128xf32>
    %88 = arith.truncf %87 : vector<1x128xf32> to vector<1x128xbf16>
    %c5 = arith.constant 5 : index
    %c0_71 = arith.constant 0 : index
    %89 = vector.load %arg12[%c5, %c0_71] : memref<10x128xbf16, #tpu.memory_space<vmem>>, vector<1x128xbf16>
    tpu.vector_store %arg12[%c5, %c0_71], %88 {strides = array<i32>} : memref<10x128xbf16, #tpu.memory_space<vmem>>, vector<1x128xbf16>,
    %90 = vector.extract_strided_slice %54 {offsets = [10, 0], sizes = [1, 128], strides = [1, 1]} : vector<16x128xf32> to vector<1x128xf32>
    %91 = vector.extract_strided_slice %54 {offsets = [11, 0], sizes = [1, 128], strides = [1, 1]} : vector<16x128xf32> to vector<1x128xf32>
    %92 = arith.addf %90, %91 : vector<1x128xf32>
    %cst_72 = arith.constant 5.000000e-01 : f32
    %93 = vector.broadcast %cst_72 : f32 to vector<1x128xf32>
    %94 = arith.mulf %93, %92 : vector<1x128xf32>
    %95 = arith.truncf %94 : vector<1x128xf32> to vector<1x128xbf16>
    %c6 = arith.constant 6 : index
    %c0_73 = arith.constant 0 : index
    %96 = vector.load %arg12[%c6, %c0_73] : memref<10x128xbf16, #tpu.memory_space<vmem>>, vector<1x128xbf16>
    tpu.vector_store %arg12[%c6, %c0_73], %95 {strides = array<i32>} : memref<10x128xbf16, #tpu.memory_space<vmem>>, vector<1x128xbf16>,
    %97 = vector.extract_strided_slice %54 {offsets = [12, 0], sizes = [1, 128], strides = [1, 1]} : vector<16x128xf32> to vector<1x128xf32>
    %98 = vector.extract_strided_slice %54 {offsets = [13, 0], sizes = [1, 128], strides = [1, 1]} : vector<16x128xf32> to vector<1x128xf32>
    %99 = arith.addf %97, %98 : vector<1x128xf32>
    %cst_74 = arith.constant 5.000000e-01 : f32
    %100 = vector.broadcast %cst_74 : f32 to vector<1x128xf32>
    %101 = arith.mulf %100, %99 : vector<1x128xf32>
    %102 = arith.truncf %101 : vector<1x128xf32> to vector<1x128xbf16>
    %c7 = arith.constant 7 : index
    %c0_75 = arith.constant 0 : index
    %103 = vector.load %arg12[%c7, %c0_75] : memref<10x128xbf16, #tpu.memory_space<vmem>>, vector<1x128xbf16>
    tpu.vector_store %arg12[%c7, %c0_75], %102 {strides = array<i32>} : memref<10x128xbf16, #tpu.memory_space<vmem>>, vector<1x128xbf16>,
    %104 = vector.extract_strided_slice %54 {offsets = [14, 0], sizes = [1, 128], strides = [1, 1]} : vector<16x128xf32> to vector<1x128xf32>
    %105 = vector.extract_strided_slice %54 {offsets = [15, 0], sizes = [1, 128], strides = [1, 1]} : vector<16x128xf32> to vector<1x128xf32>
    %106 = arith.addf %104, %105 : vector<1x128xf32>
    %cst_76 = arith.constant 5.000000e-01 : f32
    %107 = vector.broadcast %cst_76 : f32 to vector<1x128xf32>
    %108 = arith.mulf %107, %106 : vector<1x128xf32>
    %109 = arith.truncf %108 : vector<1x128xf32> to vector<1x128xbf16>
    %c8 = arith.constant 8 : index
    %c0_77 = arith.constant 0 : index
    %110 = vector.load %arg12[%c8, %c0_77] : memref<10x128xbf16, #tpu.memory_space<vmem>>, vector<1x128xbf16>
    tpu.vector_store %arg12[%c8, %c0_77], %109 {strides = array<i32>} : memref<10x128xbf16, #tpu.memory_space<vmem>>, vector<1x128xbf16>,
    %c0_78 = arith.constant 0 : index
    %c0_79 = arith.constant 0 : index
    %111 = vector.load %arg12[%c0_78, %c0_79] : memref<10x128xbf16, #tpu.memory_space<vmem>>, vector<8x128xbf16>
    %c0_80 = arith.constant 0 : index
    %c0_81 = arith.constant 0 : index
    %c0_82 = arith.constant 0 : index
    %112 = vector.load %arg4[%c0_80, %c0_81, %c0_82] : memref<3x128x64xbf16, #tpu.memory_space<vmem>>, vector<1x128x64xbf16>
    %113 = vector.shape_cast %112 : vector<1x128x64xbf16> to vector<128x64xbf16>
    %cst_83 = arith.constant dense<0.000000e+00> : vector<8x64xf32>
    %114 = tpu.matmul %111, %113, %cst_83 {dimension_numbers = #tpu.dot_dimension_numbers<[1], [0], [0], [1], [0, 0, 1, 1], [], []>} : vector<8x128xbf16>, vector<128x64xbf16>, vector<8x64xf32> -> vector<8x64xf32>
    %c1_84 = arith.constant 1 : index
    %c0_85 = arith.constant 0 : index
    %115 = vector.load %arg12[%c1_84, %c0_85] : memref<10x128xbf16, #tpu.memory_space<vmem>>, vector<8x128xbf16>
    %c1_86 = arith.constant 1 : index
    %c0_87 = arith.constant 0 : index
    %c0_88 = arith.constant 0 : index
    %116 = vector.load %arg4[%c1_86, %c0_87, %c0_88] : memref<3x128x64xbf16, #tpu.memory_space<vmem>>, vector<1x128x64xbf16>
    %117 = vector.shape_cast %116 : vector<1x128x64xbf16> to vector<128x64xbf16>
    %cst_89 = arith.constant dense<0.000000e+00> : vector<8x64xf32>
    %118 = tpu.matmul %115, %117, %cst_89 {dimension_numbers = #tpu.dot_dimension_numbers<[1], [0], [0], [1], [0, 0, 1, 1], [], []>} : vector<8x128xbf16>, vector<128x64xbf16>, vector<8x64xf32> -> vector<8x64xf32>
    %119 = arith.addf %114, %118 : vector<8x64xf32>
    %c2_90 = arith.constant 2 : index
    %c0_91 = arith.constant 0 : index
    %120 = vector.load %arg12[%c2_90, %c0_91] : memref<10x128xbf16, #tpu.memory_space<vmem>>, vector<8x128xbf16>
    %c2_92 = arith.constant 2 : index
    %c0_93 = arith.constant 0 : index
    %c0_94 = arith.constant 0 : index
    %121 = vector.load %arg4[%c2_92, %c0_93, %c0_94] : memref<3x128x64xbf16, #tpu.memory_space<vmem>>, vector<1x128x64xbf16>
    %122 = vector.shape_cast %121 : vector<1x128x64xbf16> to vector<128x64xbf16>
    %cst_95 = arith.constant dense<0.000000e+00> : vector<8x64xf32>
    %123 = tpu.matmul %120, %122, %cst_95 {dimension_numbers = #tpu.dot_dimension_numbers<[1], [0], [0], [1], [0, 0, 1, 1], [], []>} : vector<8x128xbf16>, vector<128x64xbf16>, vector<8x64xf32> -> vector<8x64xf32>
    %124 = arith.addf %119, %123 : vector<8x64xf32>
    %c0_96 = arith.constant 0 : index
    %c0_97 = arith.constant 0 : index
    %125 = vector.load %arg8[%c0_96, %c0_97] : memref<1x64xf32, #tpu.memory_space<vmem>>, vector<1x64xf32>
    %126 = vector.broadcast %125 : vector<1x64xf32> to vector<8x64xf32>
    %127 = arith.addf %124, %126 : vector<8x64xf32>
    %cst_98 = arith.constant 0.000000e+00 : f32
    %128 = vector.broadcast %cst_98 : f32 to vector<8x64xf32>
    %129 = arith.maximumf %127, %128 : vector<8x64xf32>
    %130 = arith.truncf %129 : vector<8x64xf32> to vector<8x64xbf16>
    %131 = vector.extract_strided_slice %130 {offsets = [0, 0], sizes = [1, 64], strides = [1, 1]} : vector<8x64xbf16> to vector<1x64xbf16>
    %c1_99 = arith.constant 1 : index
    %c0_100 = arith.constant 0 : index
    %132 = vector.load %arg13[%c1_99, %c0_100] : memref<18x64xbf16, #tpu.memory_space<vmem>>, vector<1x64xbf16>
    tpu.vector_store %arg13[%c1_99, %c0_100], %131 {strides = array<i32>} : memref<18x64xbf16, #tpu.memory_space<vmem>>, vector<1x64xbf16>,
    %c2_101 = arith.constant 2 : index
    %c0_102 = arith.constant 0 : index
    %133 = vector.load %arg13[%c2_101, %c0_102] : memref<18x64xbf16, #tpu.memory_space<vmem>>, vector<1x64xbf16>
    tpu.vector_store %arg13[%c2_101, %c0_102], %131 {strides = array<i32>} : memref<18x64xbf16, #tpu.memory_space<vmem>>, vector<1x64xbf16>,
    %134 = vector.extract_strided_slice %130 {offsets = [1, 0], sizes = [1, 64], strides = [1, 1]} : vector<8x64xbf16> to vector<1x64xbf16>
    %c3_103 = arith.constant 3 : index
    %c0_104 = arith.constant 0 : index
    %135 = vector.load %arg13[%c3_103, %c0_104] : memref<18x64xbf16, #tpu.memory_space<vmem>>, vector<1x64xbf16>
    tpu.vector_store %arg13[%c3_103, %c0_104], %134 {strides = array<i32>} : memref<18x64xbf16, #tpu.memory_space<vmem>>, vector<1x64xbf16>,
    %c4_105 = arith.constant 4 : index
    %c0_106 = arith.constant 0 : index
    %136 = vector.load %arg13[%c4_105, %c0_106] : memref<18x64xbf16, #tpu.memory_space<vmem>>, vector<1x64xbf16>
    tpu.vector_store %arg13[%c4_105, %c0_106], %134 {strides = array<i32>} : memref<18x64xbf16, #tpu.memory_space<vmem>>, vector<1x64xbf16>,
    %137 = vector.extract_strided_slice %130 {offsets = [2, 0], sizes = [1, 64], strides = [1, 1]} : vector<8x64xbf16> to vector<1x64xbf16>
    %c5_107 = arith.constant 5 : index
    %c0_108 = arith.constant 0 : index
    %138 = vector.load %arg13[%c5_107, %c0_108] : memref<18x64xbf16, #tpu.memory_space<vmem>>, vector<1x64xbf16>
    tpu.vector_store %arg13[%c5_107, %c0_108], %137 {strides = array<i32>} : memref<18x64xbf16, #tpu.memory_space<vmem>>, vector<1x64xbf16>,
    %c6_109 = arith.constant 6 : index
    %c0_110 = arith.constant 0 : index
    %139 = vector.load %arg13[%c6_109, %c0_110] : memref<18x64xbf16, #tpu.memory_space<vmem>>, vector<1x64xbf16>
    tpu.vector_store %arg13[%c6_109, %c0_110], %137 {strides = array<i32>} : memref<18x64xbf16, #tpu.memory_space<vmem>>, vector<1x64xbf16>,
    %140 = vector.extract_strided_slice %130 {offsets = [3, 0], sizes = [1, 64], strides = [1, 1]} : vector<8x64xbf16> to vector<1x64xbf16>
    %c7_111 = arith.constant 7 : index
    %c0_112 = arith.constant 0 : index
    %141 = vector.load %arg13[%c7_111, %c0_112] : memref<18x64xbf16, #tpu.memory_space<vmem>>, vector<1x64xbf16>
    tpu.vector_store %arg13[%c7_111, %c0_112], %140 {strides = array<i32>} : memref<18x64xbf16, #tpu.memory_space<vmem>>, vector<1x64xbf16>,
    %c8_113 = arith.constant 8 : index
    %c0_114 = arith.constant 0 : index
    %142 = vector.load %arg13[%c8_113, %c0_114] : memref<18x64xbf16, #tpu.memory_space<vmem>>, vector<1x64xbf16>
    tpu.vector_store %arg13[%c8_113, %c0_114], %140 {strides = array<i32>} : memref<18x64xbf16, #tpu.memory_space<vmem>>, vector<1x64xbf16>,
    %143 = vector.extract_strided_slice %130 {offsets = [4, 0], sizes = [1, 64], strides = [1, 1]} : vector<8x64xbf16> to vector<1x64xbf16>
    %c9_115 = arith.constant 9 : index
    %c0_116 = arith.constant 0 : index
    %144 = vector.load %arg13[%c9_115, %c0_116] : memref<18x64xbf16, #tpu.memory_space<vmem>>, vector<1x64xbf16>
    tpu.vector_store %arg13[%c9_115, %c0_116], %143 {strides = array<i32>} : memref<18x64xbf16, #tpu.memory_space<vmem>>, vector<1x64xbf16>,
    %c10 = arith.constant 10 : index
    %c0_117 = arith.constant 0 : index
    %145 = vector.load %arg13[%c10, %c0_117] : memref<18x64xbf16, #tpu.memory_space<vmem>>, vector<1x64xbf16>
    tpu.vector_store %arg13[%c10, %c0_117], %143 {strides = array<i32>} : memref<18x64xbf16, #tpu.memory_space<vmem>>, vector<1x64xbf16>,
    %146 = vector.extract_strided_slice %130 {offsets = [5, 0], sizes = [1, 64], strides = [1, 1]} : vector<8x64xbf16> to vector<1x64xbf16>
    %c11 = arith.constant 11 : index
    %c0_118 = arith.constant 0 : index
    %147 = vector.load %arg13[%c11, %c0_118] : memref<18x64xbf16, #tpu.memory_space<vmem>>, vector<1x64xbf16>
    tpu.vector_store %arg13[%c11, %c0_118], %146 {strides = array<i32>} : memref<18x64xbf16, #tpu.memory_space<vmem>>, vector<1x64xbf16>,
    %c12 = arith.constant 12 : index
    %c0_119 = arith.constant 0 : index
    %148 = vector.load %arg13[%c12, %c0_119] : memref<18x64xbf16, #tpu.memory_space<vmem>>, vector<1x64xbf16>
    tpu.vector_store %arg13[%c12, %c0_119], %146 {strides = array<i32>} : memref<18x64xbf16, #tpu.memory_space<vmem>>, vector<1x64xbf16>,
    %149 = vector.extract_strided_slice %130 {offsets = [6, 0], sizes = [1, 64], strides = [1, 1]} : vector<8x64xbf16> to vector<1x64xbf16>
    %c13 = arith.constant 13 : index
    %c0_120 = arith.constant 0 : index
    %150 = vector.load %arg13[%c13, %c0_120] : memref<18x64xbf16, #tpu.memory_space<vmem>>, vector<1x64xbf16>
    tpu.vector_store %arg13[%c13, %c0_120], %149 {strides = array<i32>} : memref<18x64xbf16, #tpu.memory_space<vmem>>, vector<1x64xbf16>,
    %c14 = arith.constant 14 : index
    %c0_121 = arith.constant 0 : index
    %151 = vector.load %arg13[%c14, %c0_121] : memref<18x64xbf16, #tpu.memory_space<vmem>>, vector<1x64xbf16>
    tpu.vector_store %arg13[%c14, %c0_121], %149 {strides = array<i32>} : memref<18x64xbf16, #tpu.memory_space<vmem>>, vector<1x64xbf16>,
    %152 = vector.extract_strided_slice %130 {offsets = [7, 0], sizes = [1, 64], strides = [1, 1]} : vector<8x64xbf16> to vector<1x64xbf16>
    %c15 = arith.constant 15 : index
    %c0_122 = arith.constant 0 : index
    %153 = vector.load %arg13[%c15, %c0_122] : memref<18x64xbf16, #tpu.memory_space<vmem>>, vector<1x64xbf16>
    tpu.vector_store %arg13[%c15, %c0_122], %152 {strides = array<i32>} : memref<18x64xbf16, #tpu.memory_space<vmem>>, vector<1x64xbf16>,
    %c16 = arith.constant 16 : index
    %c0_123 = arith.constant 0 : index
    %154 = vector.load %arg13[%c16, %c0_123] : memref<18x64xbf16, #tpu.memory_space<vmem>>, vector<1x64xbf16>
    tpu.vector_store %arg13[%c16, %c0_123], %152 {strides = array<i32>} : memref<18x64xbf16, #tpu.memory_space<vmem>>, vector<1x64xbf16>,
    %c0_124 = arith.constant 0 : index
    %c0_125 = arith.constant 0 : index
    %155 = vector.load %arg13[%c0_124, %c0_125] : memref<18x64xbf16, #tpu.memory_space<vmem>>, vector<16x64xbf16>
    %c0_126 = arith.constant 0 : index
    %c0_127 = arith.constant 0 : index
    %c0_128 = arith.constant 0 : index
    %156 = vector.load %arg5[%c0_126, %c0_127, %c0_128] : memref<3x64x128xbf16, #tpu.memory_space<vmem>>, vector<1x64x128xbf16>
    %157 = vector.shape_cast %156 : vector<1x64x128xbf16> to vector<64x128xbf16>
    %cst_129 = arith.constant dense<0.000000e+00> : vector<16x128xf32>
    %158 = tpu.matmul %155, %157, %cst_129 {dimension_numbers = #tpu.dot_dimension_numbers<[1], [0], [0], [1], [0, 0, 1, 1], [], []>} : vector<16x64xbf16>, vector<64x128xbf16>, vector<16x128xf32> -> vector<16x128xf32>
    %c1_130 = arith.constant 1 : index
    %c0_131 = arith.constant 0 : index
    %159 = vector.load %arg13[%c1_130, %c0_131] : memref<18x64xbf16, #tpu.memory_space<vmem>>, vector<16x64xbf16>
    %c1_132 = arith.constant 1 : index
    %c0_133 = arith.constant 0 : index
    %c0_134 = arith.constant 0 : index
    %160 = vector.load %arg5[%c1_132, %c0_133, %c0_134] : memref<3x64x128xbf16, #tpu.memory_space<vmem>>, vector<1x64x128xbf16>
    %161 = vector.shape_cast %160 : vector<1x64x128xbf16> to vector<64x128xbf16>
    %cst_135 = arith.constant dense<0.000000e+00> : vector<16x128xf32>
    %162 = tpu.matmul %159, %161, %cst_135 {dimension_numbers = #tpu.dot_dimension_numbers<[1], [0], [0], [1], [0, 0, 1, 1], [], []>} : vector<16x64xbf16>, vector<64x128xbf16>, vector<16x128xf32> -> vector<16x128xf32>
    %163 = arith.addf %158, %162 : vector<16x128xf32>
    %c2_136 = arith.constant 2 : index
    %c0_137 = arith.constant 0 : index
    %164 = vector.load %arg13[%c2_136, %c0_137] : memref<18x64xbf16, #tpu.memory_space<vmem>>, vector<16x64xbf16>
    %c2_138 = arith.constant 2 : index
    %c0_139 = arith.constant 0 : index
    %c0_140 = arith.constant 0 : index
    %165 = vector.load %arg5[%c2_138, %c0_139, %c0_140] : memref<3x64x128xbf16, #tpu.memory_space<vmem>>, vector<1x64x128xbf16>
    %166 = vector.shape_cast %165 : vector<1x64x128xbf16> to vector<64x128xbf16>
    %cst_141 = arith.constant dense<0.000000e+00> : vector<16x128xf32>
    %167 = tpu.matmul %164, %166, %cst_141 {dimension_numbers = #tpu.dot_dimension_numbers<[1], [0], [0], [1], [0, 0, 1, 1], [], []>} : vector<16x64xbf16>, vector<64x128xbf16>, vector<16x128xf32> -> vector<16x128xf32>
    %168 = arith.addf %163, %167 : vector<16x128xf32>
    %c0_142 = arith.constant 0 : index
    %c0_143 = arith.constant 0 : index
    %169 = vector.load %arg9[%c0_142, %c0_143] : memref<1x128xf32, #tpu.memory_space<vmem>>, vector<1x128xf32>
    %170 = vector.broadcast %169 : vector<1x128xf32> to vector<16x128xf32>
    %171 = arith.addf %168, %170 : vector<16x128xf32>
    %172 = arith.addf %171, %54 : vector<16x128xf32>
    %173 = arith.addf %172, %13 : vector<16x128xf32>
    %174 = vector.shape_cast %173 : vector<16x128xf32> to vector<1x16x128xf32>
    %c0_144 = arith.constant 0 : index
    %c0_145 = arith.constant 0 : index
    %c0_146 = arith.constant 0 : index
    %175 = vector.load %arg10[%c0_144, %c0_145, %c0_146] : memref<1x16x128xf32, #tpu.memory_space<vmem>>, vector<1x16x128xf32>
    tpu.vector_store %arg10[%c0_144, %c0_145, %c0_146], %174 {strides = array<i32>} : memref<1x16x128xf32, #tpu.memory_space<vmem>>, vector<1x16x128xf32>,
    return
  }
  func.func @transform_0(%arg0: i32) -> (i32, i32, i32) {
    %c0_i32 = arith.constant 0 : i32
    %c0_i32_0 = arith.constant 0 : i32
    %c0_i32_1 = arith.constant 0 : i32
    return %arg0, %c0_i32, %c0_i32_0 : i32, i32, i32
  }
  func.func @transform_1(%arg0: i32) -> (i32, i32, i32) {
    %c0_i32 = arith.constant 0 : i32
    %c0_i32_0 = arith.constant 0 : i32
    %c0_i32_1 = arith.constant 0 : i32
    %c0_i32_2 = arith.constant 0 : i32
    return %c0_i32, %c0_i32_0, %c0_i32_1 : i32, i32, i32
  }
  func.func @transform_2(%arg0: i32) -> (i32, i32, i32) {
    %c0_i32 = arith.constant 0 : i32
    %c0_i32_0 = arith.constant 0 : i32
    %c0_i32_1 = arith.constant 0 : i32
    %c0_i32_2 = arith.constant 0 : i32
    return %c0_i32, %c0_i32_0, %c0_i32_1 : i32, i32, i32
  }
  func.func @transform_3(%arg0: i32) -> (i32, i32, i32) {
    %c0_i32 = arith.constant 0 : i32
    %c0_i32_0 = arith.constant 0 : i32
    %c0_i32_1 = arith.constant 0 : i32
    %c0_i32_2 = arith.constant 0 : i32
    return %c0_i32, %c0_i32_0, %c0_i32_1 : i32, i32, i32
  }
  func.func @transform_4(%arg0: i32) -> (i32, i32, i32) {
    %c0_i32 = arith.constant 0 : i32
    %c0_i32_0 = arith.constant 0 : i32
    %c0_i32_1 = arith.constant 0 : i32
    %c0_i32_2 = arith.constant 0 : i32
    return %c0_i32, %c0_i32_0, %c0_i32_1 : i32, i32, i32
  }
  func.func @transform_5(%arg0: i32) -> (i32, i32) {
    %c0_i32 = arith.constant 0 : i32
    %c0_i32_0 = arith.constant 0 : i32
    %c0_i32_1 = arith.constant 0 : i32
    return %c0_i32, %c0_i32_0 : i32, i32
  }
  func.func @transform_6(%arg0: i32) -> (i32, i32) {
    %c0_i32 = arith.constant 0 : i32
    %c0_i32_0 = arith.constant 0 : i32
    %c0_i32_1 = arith.constant 0 : i32
    return %c0_i32, %c0_i32_0 : i32, i32
  }
  func.func @transform_7(%arg0: i32) -> (i32, i32) {
    %c0_i32 = arith.constant 0 : i32
    %c0_i32_0 = arith.constant 0 : i32
    %c0_i32_1 = arith.constant 0 : i32
    return %c0_i32, %c0_i32_0 : i32, i32
  }
  func.func @transform_8(%arg0: i32) -> (i32, i32) {
    %c0_i32 = arith.constant 0 : i32
    %c0_i32_0 = arith.constant 0 : i32
    %c0_i32_1 = arith.constant 0 : i32
    return %c0_i32, %c0_i32_0 : i32, i32
  }
  func.func @transform_9(%arg0: i32) -> (i32, i32, i32) {
    %c0_i32 = arith.constant 0 : i32
    %c0_i32_0 = arith.constant 0 : i32
    %c0_i32_1 = arith.constant 0 : i32
    return %arg0, %c0_i32, %c0_i32_0 : i32, i32, i32
  }
}

</mosaic_0001>

<bundles_post_ra>
// kernel: tile.23
= control target key start
LH: loop header
LB: loop body
LE: loop exit
PB: predicated region body
PF: predicated region fallthrough
CT: control target
= control target key end

     0   :  { %s28_s0 = inlined_call_operand.vmem [shape: f32[8], index: 0, kind: input, shape index: {}]   ;;  %s29_s1 = inlined_call_operand.vmem [shape: f32[16,8], index: 1, kind: output, shape index: {}]  }
   0x1   :  { %v4_v0 = vld [vmem:[%s28_s0] ss:$0 sm:$0xff] }
   0x2   :  { %5 = vst [vmem:[%s29_s1] sm:$0xff] %v4_v0 }
   0x3   :  { %8 = vst [vmem:[%s29_s1 + $0x8] sm:$0xff] %v4_v0 }

// kernel: tile.24
= control target key start
LH: loop header
LB: loop body
LE: loop exit
PB: predicated region body
PF: predicated region fallthrough
CT: control target
= control target key end

     0   :  { %s131_s10 = smov 120   ;;  %s132_s11 = smov 104   ;;  %vm3_vm0 = vcmask 64512   ;;  %vm9_vm1 = vcmask 1048512   ;;  %vm15_vm2 = vcmask 982912   ;;  %vm21_vm3 = vcmask 917312   ;;  %s207_s0 = inlined_call_operand.vmem [shape: f32[16,8], index: 0, kind: input, shape index: {}]   ;;  %s208_s1 = inlined_call_operand.vmem [shape: f32[1,128], index: 1, kind: output, shape index: {}]  }
   0x1   :  { %v101_v0 = vld [vmem:[%s207_s0 + $0xf] sm:$0x1]   ;;  %v103_v1 = vld [vmem:[%s207_s0 + $0xd] sm:$0x1]   ;;  %v105_v2 = vld [vmem:[%s207_s0 + $0xb] sm:$0x1]  }
   0x2   :  { %7 = vrot.lane.b32.xlu0 %v101_v0, %s131_s10  ;;  %19 = vrot.lane.b32.xlu1 %v103_v1, %s132_s11  ;;  %s133_s14 = smov 88   ;;  %v102_v3 = vld [vmem:[%s207_s0 + $0xe] sm:$0x1]   ;;  %v104_v4 = vld [vmem:[%s207_s0 + $0xc] sm:$0x1]   ;;  %s134_s19 = smov 112  }
   0x3   :  { %31 = vrot.lane.b32.xlu2 %v105_v2, %s133_s14  ;;  %s135_s20 = smov 96   ;;  %v106_v5 = vld [vmem:[%s207_s0 + $0xa] sm:$0x1]   ;;  %s136_s23 = smov 80   ;;  %v107_v6 = vld [vmem:[%s207_s0 + $0x9] sm:$0x1]  }
   0x4   :  { %v108_v7 = vld [vmem:[%s207_s0 + $0x8] sm:$0x1]   ;;  %s137_s28 = smov 72   ;;  %s138_s29 = smov 64   ;;  %v109_v8 = vld [vmem:[%s207_s0 + $0x7] sm:$0x1]  }
   0x5   :  { %s139_s3 = smov 56   ;;  %v110_v9 = vld [vmem:[%s207_s0 + $0x6] sm:$0x1]   ;;  %v111_v10 = vld [vmem:[%s207_s0 + $0x5] sm:$0x1]   ;;  %s140_s8 = smov 48  }
   0x6   :  { %s141_s9 = smov 40   ;;  %v112_v11 = vld [vmem:[%s207_s0 + $0x4] sm:$0x1]   ;;  %s142_s12 = smov 32   ;;  %v113_v12 = vld [vmem:[%s207_s0 + $0x3] sm:$0x1]  }
   0x7   :  { %v114_v13 = vld [vmem:[%s207_s0 + $0x2] sm:$0x1]   ;;  %s143_s17 = smov 24   ;;  %s144_s18 = smov 16   ;;  %v115_v14 = vld [vmem:[%s207_s0 + $0x1] sm:$0x1]  }
   0x8   :  { %s145_s21 = smov 8   ;;  %v2_v15 = vld [vmem:[%s207_s0] sm:$0x1]   ;;  %vm27_vm4 = vcmask 851712   ;;  %vm33_vm5 = vcmask 786112   ;;  %vm39_vm6 = vcmask 720512  }
   0x9   :  { %4 = vst.msk [vmem:[#allocation0] sm:$0x1] %vm3_vm0, %v2_v15   ;;  %vm45_vm7 = vcmask 654912   ;;  %vm51_vm8 = vcmask 589312   ;;  %vm57_vm9 = vcmask 523712   ;;  %vm63_vm10 = vcmask 458112  }
   0xa   :  { %13 = vrot.lane.b32.xlu0 %v102_v3, %s134_s19  ;;  %25 = vrot.lane.b32.xlu1 %v104_v4, %s135_s20  ;;  %vm69_vm11 = vcmask 392512   ;;  %vm75_vm12 = vcmask 326912   ;;  %vm81_vm13 = vcmask 261312   ;;  %vm87_vm14 = vcmask 195712  }
   0xb   :  { %37 = vrot.lane.b32.xlu2 %v106_v5, %s136_s23  ;;  %vm93_vm15 = vcmask 130112  }
  0x12   :  { %43 = vrot.lane.b32.xlu0 %v107_v6, %s137_s28  ;;  %49 = vrot.lane.b32.xlu1 %v108_v7, %s138_s29 }
  0x13   :  { %55 = vrot.lane.b32.xlu2 %v109_v8, %s139_s3 }
  0x1a   :  { %61 = vrot.lane.b32.xlu0 %v110_v9, %s140_s8  ;;  %67 = vrot.lane.b32.xlu1 %v111_v10, %s141_s9 }
  0x1b   :  { %73 = vrot.lane.b32.xlu2 %v112_v11, %s142_s12 }
  0x22   :  { %79 = vrot.lane.b32.xlu0 %v113_v12, %s143_s17  ;;  %85 = vrot.lane.b32.xlu1 %v114_v13, %s144_s18 }
  0x23   :  { %91 = vrot.lane.b32.xlu2 %v115_v14, %s145_s21 }
  0x5d   :  { %v32_v16 = vpop.permute.xlu2 %31  }
  0x65   :  { %v38_v17 = vpop.permute.xlu2 %37  }
  0x6d   :  { %v56_v18 = vpop.permute.xlu2 %55  }
  0x74   :  { %v8_v19 = vpop.permute.xlu0 %7   ;;  %v20_v20 = vpop.permute.xlu1 %19  }
  0x75   :  { %10 = vst.msk [vmem:[#allocation0] sm:$0x1] %vm9_vm1, %v8_v19   ;;  %v74_v21 = vpop.permute.xlu2 %73  }
  0x7c   :  { %v14_v22 = vpop.permute.xlu0 %13   ;;  %v26_v23 = vpop.permute.xlu1 %25  }
  0x7d   :  { %16 = vst.msk [vmem:[#allocation0] sm:$0x1] %vm15_vm2, %v14_v22   ;;  %v92_v24 = vpop.permute.xlu2 %91  }
  0x7e   :  { %22 = vst.msk [vmem:[#allocation0] sm:$0x1] %vm21_vm3, %v20_v20  }
  0x7f   :  { %28 = vst.msk [vmem:[#allocation0] sm:$0x1] %vm27_vm4, %v26_v23  }
  0x80   :  { %34 = vst.msk [vmem:[#allocation0] sm:$0x1] %vm33_vm5, %v32_v16  }
  0x81   :  { %40 = vst.msk [vmem:[#allocation0] sm:$0x1] %vm39_vm6, %v38_v17  }
  0x84   :  { %v44_v25 = vpop.permute.xlu0 %43   ;;  %v50_v26 = vpop.permute.xlu1 %49  }
  0x85   :  { %46 = vst.msk [vmem:[#allocation0] sm:$0x1] %vm45_vm7, %v44_v25  }
  0x86   :  { %52 = vst.msk [vmem:[#allocation0] sm:$0x1] %vm51_vm8, %v50_v26  }
  0x87   :  { %58 = vst.msk [vmem:[#allocation0] sm:$0x1] %vm57_vm9, %v56_v18  }
  0x8c   :  { %v62_v27 = vpop.permute.xlu0 %61   ;;  %v68_v28 = vpop.permute.xlu1 %67  }
  0x8d   :  { %64 = vst.msk [vmem:[#allocation0] sm:$0x1] %vm63_vm10, %v62_v27  }
  0x8e   :  { %70 = vst.msk [vmem:[#allocation0] sm:$0x1] %vm69_vm11, %v68_v28  }
  0x8f   :  { %76 = vst.msk [vmem:[#allocation0] sm:$0x1] %vm75_vm12, %v74_v21  }
  0x94   :  { %v80_v29 = vpop.permute.xlu0 %79   ;;  %v86_v30 = vpop.permute.xlu1 %85  }
  0x95   :  { %82 = vst.msk [vmem:[#allocation0] sm:$0x1] %vm81_vm13, %v80_v29  }
  0x96   :  { %88 = vst.msk [vmem:[#allocation0] sm:$0x1] %vm87_vm14, %v86_v30  }
  0x97   :  { %94 = vst.msk [vmem:[#allocation0] sm:$0x1] %vm93_vm15, %v92_v24  }
  0x9e   :  { %v97_v31 = vld [vmem:[#allocation0] sm:$0x1] }
  0x9f   :  { %100 = vst [vmem:[%s208_s1] sm:$0x1] %v97_v31 }

// kernel: tile.33
= control target key start
LH: loop header
LB: loop body
LE: loop exit
PB: predicated region body
PF: predicated region fallthrough
CT: control target
= control target key end

     0   :  { %s22_s0 = inlined_call_operand.vmem [shape: f32[8], index: 0, kind: input, shape index: {}]   ;;  %s23_s1 = inlined_call_operand.vmem [shape: f32[8,8], index: 1, kind: output, shape index: {}]  }
   0x1   :  { %v4_v0 = vld [vmem:[%s22_s0] ss:$0 sm:$0xff] }
   0x2   :  { %5 = vst [vmem:[%s23_s1] sm:$0xff] %v4_v0 }

// kernel: tile.34
= control target key start
LH: loop header
LB: loop body
LE: loop exit
PB: predicated region body
PF: predicated region fallthrough
CT: control target
= control target key end

     0   :  { %s67_s10 = smov 56   ;;  %s68_s11 = smov 40   ;;  %vm3_vm0 = vcmask 64512   ;;  %vm9_vm1 = vcmask 523712   ;;  %vm15_vm2 = vcmask 458112   ;;  %vm21_vm3 = vcmask 392512   ;;  %s111_s0 = inlined_call_operand.vmem [shape: f32[8,8], index: 0, kind: input, shape index: {}]   ;;  %s112_s1 = inlined_call_operand.vmem [shape: f32[1,64], index: 1, kind: output, shape index: {}]  }
   0x1   :  { %v53_v0 = vld [vmem:[%s111_s0 + $0x7] sm:$0x1]   ;;  %v55_v1 = vld [vmem:[%s111_s0 + $0x5] sm:$0x1]   ;;  %v57_v2 = vld [vmem:[%s111_s0 + $0x3] sm:$0x1]  }
   0x2   :  { %7 = vrot.lane.b32.xlu0 %v53_v0, %s67_s10  ;;  %19 = vrot.lane.b32.xlu1 %v55_v1, %s68_s11  ;;  %s69_s14 = smov 24   ;;  %v54_v3 = vld [vmem:[%s111_s0 + $0x6] sm:$0x1]   ;;  %v56_v4 = vld [vmem:[%s111_s0 + $0x4] sm:$0x1]   ;;  %s70_s21 = smov 48  }
   0x3   :  { %31 = vrot.lane.b32.xlu2 %v57_v2, %s69_s14  ;;  %v58_v5 = vld [vmem:[%s111_s0 + $0x2] sm:$0x1]   ;;  %s71_s22 = smov 32   ;;  %s72_s23 = smov 16   ;;  %v59_v6 = vld [vmem:[%s111_s0 + $0x1] sm:$0x1]  }
   0x4   :  { %s73_s26 = smov 8   ;;  %v2_v7 = vld [vmem:[%s111_s0] sm:$0x1]   ;;  %vm27_vm4 = vcmask 326912   ;;  %vm33_vm5 = vcmask 261312   ;;  %vm39_vm6 = vcmask 195712  }
   0x5   :  { %4 = vst.msk [vmem:[#allocation0] sm:$0x1] %vm3_vm0, %v2_v7   ;;  %vm45_vm7 = vcmask 130112  }
   0xa   :  { %13 = vrot.lane.b32.xlu0 %v54_v3, %s70_s21  ;;  %25 = vrot.lane.b32.xlu1 %v56_v4, %s71_s22 }
   0xb   :  { %37 = vrot.lane.b32.xlu2 %v58_v5, %s72_s23 }
  0x12   :  { %43 = vrot.lane.b32.xlu0 %v59_v6, %s73_s26 }
  0x5d   :  { %v32_v8 = vpop.permute.xlu2 %31  }
  0x65   :  { %v38_v9 = vpop.permute.xlu2 %37  }
  0x74   :  { %v8_v10 = vpop.permute.xlu0 %7   ;;  %v20_v11 = vpop.permute.xlu1 %19  }
  0x75   :  { %10 = vst.msk [vmem:[#allocation0] sm:$0x1] %vm9_vm1, %v8_v10  }
  0x7c   :  { %v14_v12 = vpop.permute.xlu0 %13   ;;  %v26_v13 = vpop.permute.xlu1 %25  }
  0x7d   :  { %16 = vst.msk [vmem:[#allocation0] sm:$0x1] %vm15_vm2, %v14_v12  }
  0x7e   :  { %22 = vst.msk [vmem:[#allocation0] sm:$0x1] %vm21_vm3, %v20_v11  }
  0x7f   :  { %28 = vst.msk [vmem:[#allocation0] sm:$0x1] %vm27_vm4, %v26_v13  }
  0x80   :  { %34 = vst.msk [vmem:[#allocation0] sm:$0x1] %vm33_vm5, %v32_v8  }
  0x81   :  { %40 = vst.msk [vmem:[#allocation0] sm:$0x1] %vm39_vm6, %v38_v9  }
  0x84   :  { %v44_v14 = vpop.permute.xlu0 %43  }
  0x85   :  { %46 = vst.msk [vmem:[#allocation0] sm:$0x1] %vm45_vm7, %v44_v14  }
  0x8c   :  { %v49_v15 = vld [vmem:[#allocation0] sm:$0x1] }
  0x8d   :  { %52 = vst [vmem:[%s112_s1] sm:$0x1] %v49_v15 }

// kernel: block_forward.1
= control target key start
LH: loop header
LB: loop body
LE: loop exit
PB: predicated region body
PF: predicated region fallthrough
CT: control target
= control target key end

     0   :  { %s2298_s30 = smov 0   ;;  %s2754_s0 = inlined_call_operand.vmem [shape: f32[2,16,128], index: 0, kind: input, shape index: {}]   ;;  %s2755_s1 = inlined_call_operand.vmem [shape: bf16[3,128,128], index: 1, kind: input, shape index: {}]   ;;  %s2756_s2 = inlined_call_operand.vmem [shape: bf16[3,128,128], index: 2, kind: input, shape index: {}]   ;;  %s2757_s3 = inlined_call_operand.vmem [shape: bf16[3,128,64], index: 3, kind: input, shape index: {}]   ;;  %s2758_s4 = inlined_call_operand.vmem [shape: bf16[3,64,128], index: 4, kind: input, shape index: {}]   ;;  %s2759_s5 = inlined_call_operand.vmem [shape: f32[1,128], index: 5, kind: input, shape index: {}]   ;;  %s2760_s6 = inlined_call_operand.vmem [shape: f32[1,128], index: 6, kind: input, shape index: {}]   ;;  %s2761_s7 = inlined_call_operand.vmem [shape: f32[1,64], index: 7, kind: input, shape index: {}]   ;;  %s2762_s8 = inlined_call_operand.vmem [shape: f32[1,128], index: 8, kind: input, shape index: {}]   ;;  %s2763_s9 = inlined_call_operand.vmem [shape: f32[2,16,128], index: 9, kind: output, shape index: {}]  }
   0x1 LB: > { %s1658_s10 = sadd.s32 4294967295, %s2246_s30   ;;  %p1662_p0 = scmp.ge.s32.totalorder %s2246_s30, 1  ;;  %s2246_s30 = sphi %s2298_s30, %s19_s30  }
   0x2   : > { %p287_p1 = scmp.lt.s32.totalorder %s2246_s30, 3 }
   0x4   : > { %p288_p2 = pnand %p1662_p0, %p287_p1 }
   0x5   : > { %p323_p3 = scmp.lt.s32.totalorder (!%p288_p2), %s1658_s10, 1 }
   0x6   : > { %291 = sbr.rel (%p288_p2) target bundleno = 727 (0x2d7), region = 56 }
   0xb   : > { %v2137_v0 = vld [vmem:[%s2755_s1 + $0x38] sm:$0xff]  ;;  %v2136_v3 = vld [vmem:[%s2755_s1 + $0x30] sm:$0xff]  ;;  %s2789_s10 = smov (!%p323_p3, %s1658_s10), 1  ;;  %vm334_vm0 = vcmask 1040384   ;;  %vm335_vm1 = vsmask.f32 256 }
   0xc   : > { %v2153_v1 = vld [vmem:[%s2755_s1 + $0xb8] sm:$0xff]  ;;  %564 = vmatpush.bf16.msra.mxu1 %v2137_v0  ;;  %v2152_v4 = vld [vmem:[%s2755_s1 + $0xb0] sm:$0xff]  ;;  %s2128_s23 = sshll.u32 %s2789_s10, 4  ;;  %v2135_v6 = vld [vmem:[%s2755_s1 + $0x28] sm:$0xff]  ;;  %vm340_vm3 = vsmask.f32 7938 }
   0xd   : > { %v2145_v2 = vld [vmem:[%s2755_s1 + $0x78] sm:$0xff]  ;;  %652 = vmatpush.bf16.msra.mxu2 %v2153_v1  ;;  %v2144_v5 = vld [vmem:[%s2755_s1 + $0x70] sm:$0xff]  ;;  %s327_s26 = scalar_lea.vmem %s2754_s0, %s2128_s23  ;;  %v2151_v7 = vld [vmem:[%s2755_s1 + $0xa8] sm:$0xff]  ;;  %vm364_vm4 = vsmask.f32 4368  ;;  %vm386_vm6 = vcmask 1043456   ;;  %s332_s12 = scalar_lea.vmem %s2763_s9, %s2128_s23 }
   0xe   : > { %501 = vmatpush.bf16.msra.mxu0 %v2145_v2  ;;  %v2143_v8 = vld [vmem:[%s2755_s1 + $0x68] sm:$0xff]  ;;  %v2134_v9 = vld [vmem:[%s2755_s1 + $0x20] sm:$0xff]  ;;  %vm2349_vm2 = vmand %vm334_vm0, %vm335_vm1  ;;  %vm599_vm9 = vcmask 1046528   ;;  %vm2764_vm10 = vsmask.f32 7424  ;;  %vm996_vm11 = vcmask 1041409  }
   0xf   : > { %v2150_v10 = vld [vmem:[%s2755_s1 + $0xa0] sm:$0xff]  ;;  %v2360_v16 = vld [vmem:[%s327_s26 + $0x8] sm:$0xff]  ;;  %vm2368_vm5 = vmand %vm334_vm0, %vm340_vm3  ;;  %vm997_vm12 = vsmask.f32 1280  ;;  %vm1014_vm13 = vcmask 1042434  }
  0x10   : > { %565 = vmatpush.bf16.msra.mxu1 %v2136_v3  ;;  %v337_v12 = vld [vmem:[#allocation2] sm:$0x1]  ;;  %v342_v18 = vld [vmem:[#allocation2 + $0x8] sm:$0x1]  ;;  %v363_v19 = vpack.c.bf16 %v2360_v16, %v2360_v16  ;;  %v2133_v27 = vld [vmem:[%s2755_s1 + $0x18] sm:$0xff] }
  0x11   : > { %653 = vmatpush.bf16.msra.mxu2 %v2152_v4  ;;  %v2353_v13 = vld [vmem:[%s327_s26] sm:$0xff]  ;;  %v338_v15 = vsel %vm2349_vm2, 0, %v337_v12  ;;  %v343_v25 = vsel %vm2368_vm5, 0, %v342_v18  ;;  %v2149_v28 = vld [vmem:[%s2755_s1 + $0x98] sm:$0xff]  ;;  %vm2382_vm7 = vmor %vm335_vm1, %vm364_vm4  ;;  %vm1015_vm14 = vsmask.f32 2304 }
  0x12   : > { %502 = vmatpush.bf16.msra.mxu0 %v2144_v5  ;;  %v2142_v14 = vld [vmem:[%s2755_s1 + $0x60] sm:$0xff]  ;;  %v362_v17 = vpack.c.bf16 %v2353_v13, %v2353_v13  ;;  %339 = vst [vmem:[#allocation2] sm:$0x1] %v338_v15  ;;  %v375_v23 = vshrl.u32 %v363_v19, 16  ;;  %v378_v24 = vshll.u32 %v363_v19, 16  ;;  %v2141_v31 = vld [vmem:[%s2755_s1 + $0x58] sm:$0xff]  ;;  %vm2390_vm8 = vmand %vm386_vm6, %vm340_vm3 }
  0x13   : > { %344 = vst [vmem:[#allocation2 + $0x8] sm:$0x1] %v343_v25  ;;  %v2132_v38 = vld [vmem:[%s2755_s1 + $0x10] sm:$0xff]  ;;  %v2131_v45 = vld [vmem:[%s2755_s1 + $0x8] sm:$0xff]  ;;  %v2130_v48 = vld [vmem:[%s2755_s1] sm:$0xff]  ;;  %vm1039_vm6 = vcmask 1043459  }
  0x14   : > { %566 = vmatpush.bf16.msra.mxu1 %v2135_v6  ;;  %v367_v20 = vshrl.u32 %v362_v17, 16  ;;  %v370_v21 = vshll.u32 %v362_v17, 16  ;;  %v377_v30 = vrot.slane %v375_v23, 7  ;;  %v2148_v39 = vld [vmem:[%s2755_s1 + $0x90] sm:$0xff]  ;;  %v2147_v46 = vld [vmem:[%s2755_s1 + $0x88] sm:$0xff]  ;;  %v2146_v49 = vld [vmem:[%s2755_s1 + $0x80] sm:$0xff] }
  0x15   : > { %654 = vmatpush.bf16.msra.mxu2 %v2151_v7  ;;  %v2140_v42 = vld [vmem:[%s2755_s1 + $0x50] sm:$0xff]  ;;  %v2139_v47 = vld [vmem:[%s2755_s1 + $0x48] sm:$0xff]  ;;  %v2138_v52 = vld [vmem:[%s2755_s1 + $0x40] sm:$0xff]  ;;  %vm1005_vm4 = vsmask.f32 7942 }
  0x16   : > { %503 = vmatpush.bf16.msra.mxu0 %v2143_v8  ;;  %v369_v26 = vrot.slane %v367_v20, 7  ;;  %v380_v35 = vor.u32 %v378_v24, %v377_v30  ;;  %v382_v36 = vrot.slane %v377_v30, 4  ;;  %v2161_v8 = vld [vmem:[%s2756_s2 + $0x38] sm:$0xff]  ;;  %v2159_v12 = vld [vmem:[%s2756_s2 + $0x28] sm:$0xff]  ;;  %v2176_v15 = vld [vmem:[%s2756_s2 + $0xb0] sm:$0xff] }
  0x17   : > { %v2158_v17 = vld [vmem:[%s2756_s2 + $0x20] sm:$0xff]  ;;  %v2168_v18 = vld [vmem:[%s2756_s2 + $0x70] sm:$0xff]  ;;  %v2175_v19 = vld [vmem:[%s2756_s2 + $0xa8] sm:$0xff] }
  0x18   : > { %567 = vmatpush.bf16.msra.mxu1 %v2134_v9  ;;  %v372_v32 = vor.u32 %v370_v21, %v369_v26  ;;  %v373_v33 = vrot.slane %v369_v26, 4  ;;  %v2160_v9 = vld [vmem:[%s2756_s2 + $0x30] sm:$0xff]  ;;  %v2157_v20 = vld [vmem:[%s2756_s2 + $0x18] sm:$0xff]  ;;  %v2167_v21 = vld [vmem:[%s2756_s2 + $0x68] sm:$0xff] }
  0x19   : > { %655 = vmatpush.bf16.msra.mxu2 %v2150_v10  ;;  %v388_v37 = vld [vmem:[#allocation2] sm:$0xf]  ;;  %v2177_v10 = vld [vmem:[%s2756_s2 + $0xb8] sm:$0xff]  ;;  %v2156_v24 = vld [vmem:[%s2756_s2 + $0x10] sm:$0xff] }
  0x1a   : > { %504 = vmatpush.bf16.msra.mxu0 %v2142_v14  ;;  %v381_v40 = vsel %vm2382_vm7, %v373_v33, %v380_v35  ;;  %v389_v41 = vsel %vm2390_vm8, %v372_v32, %v388_v37  ;;  %v392_v43 = vld [vmem:[#allocation2 + $0x8] sm:$0x1]  ;;  %v2169_v14 = vld [vmem:[%s2756_s2 + $0x78] sm:$0xff]  ;;  %v2174_v23 = vld [vmem:[%s2756_s2 + $0xa0] sm:$0xff] }
  0x1b   : > { %390 = vst [vmem:[#allocation2] sm:$0xf] %v389_v41  ;;  %v393_v44 = vsel %vm2349_vm2, %v382_v36, %v392_v43  ;;  %811 = vmatpush.bf16.msra.mxu3 %v2169_v14  ;;  %v2166_v25 = vld [vmem:[%s2756_s2 + $0x60] sm:$0xff]  ;;  %v2173_v26 = vld [vmem:[%s2756_s2 + $0x98] sm:$0xff]  ;;  %v2172_v30 = vld [vmem:[%s2756_s2 + $0x90] sm:$0xff] }
  0x1c   : > { %568 = vmatpush.bf16.msra.mxu1 %v2133_v27  ;;  %391 = vst [vmem:[#allocation2 + $0x4] sm:$0xf] %v381_v40  ;;  %v2155_v27 = vld [vmem:[%s2756_s2 + $0x8] sm:$0xff]  ;;  %v2154_v33 = vld [vmem:[%s2756_s2] sm:$0xff]  ;;  %v2164_v36 = vld [vmem:[%s2756_s2 + $0x50] sm:$0xff] }
  0x1d   : > { %656 = vmatpush.bf16.msra.mxu2 %v2149_v28  ;;  %394 = vst [vmem:[#allocation2 + $0x8] sm:$0x1] %v393_v44  ;;  %v2165_v28 = vld [vmem:[%s2756_s2 + $0x58] sm:$0xff]  ;;  %v2236_v37 = vld [vmem:[%s2759_s5] ss:$0 sm:$0xff]  ;;  %v2171_v40 = vld [vmem:[%s2756_s2 + $0x88] sm:$0xff] }
  0x1e   : > { %505 = vmatpush.bf16.msra.mxu0 %v2141_v31  ;;  %v2170_v44 = vld [vmem:[%s2756_s2 + $0x80] sm:$0xff]  ;;  %vm998_vm15 = vmand %vm996_vm11, %vm997_vm12 }
  0x1f   : > { %812 = vmatpush.bf16.msra.mxu3 %v2168_v18  ;;  %vm1016_vm0 = vmand %vm1014_vm13, %vm1015_vm14 }
  0x20   : > { %569 = vmatpush.bf16.msra.mxu1 %v2132_v38 }
  0x21   : > { %657 = vmatpush.bf16.msra.mxu2 %v2148_v39 }
  0x22   : > { %506 = vmatpush.bf16.msra.mxu0 %v2140_v42  ;;  %v2424_v50 = vld [vmem:[#allocation2] sm:$0xf]  ;;  %v2163_v42 = vld [vmem:[%s2756_s2 + $0x48] sm:$0xff] }
  0x23   : > { %v578_v51 = vld [vmem:[#allocation2] sm:$0xe]  ;;  %v396_v53 = vld [vmem:[#allocation2 + $0x4] sm:$0xf]  ;;  %v434_v54 = vunpack.c.l.b16 %v2424_v50  ;;  %813 = vmatpush.bf16.msra.mxu3 %v2167_v21 }
  0x24   : > { %570 = vmatpush.bf16.msra.mxu1 %v2131_v45  ;;  %v597_v55 = vunpack.c.l.b16 %v578_v51  ;;  %v435_v56 = vunpack.c.l.b16 %v396_v53  ;;  %v413_v57 = vld [vmem:[#allocation2 + $0x8] sm:$0x1] }
  0x25   : > { %658 = vmatpush.bf16.msra.mxu2 %v2147_v46  ;;  %v436_v59 = vunpack.c.l.b16 %v413_v57  ;;  %v2162_v46 = vld [vmem:[%s2756_s2 + $0x40] sm:$0xff] }
  0x26   : > { %507 = vmatpush.bf16.msra.mxu0 %v2139_v47  ;;  %v437_v58 = vpack.c.b16 %v435_v56, %v434_v54  ;;  %v598_v60 = vpack.c.b16 %v435_v56, %v597_v55 }
  0x27   : > { %v438_v61 = vpack.c.b16 %v436_v59, %v436_v59  ;;  %814 = vmatpush.bf16.msra.mxu3 %v2166_v25 }
  0x28   : > { %571 = vmatpush.bf16.msra.mxu1 %v2130_v48  ;;  %v600_v62 = vrot.slane %v598_v60, 1  ;;  %v441_v63 = vshrl.u32 %v437_v58, 16  ;;  %v443_v0 = vshll.u32 %v437_v58, 16 }
  0x29   : > { %659 = vmatpush.bf16.msra.mxu2 %v2146_v49  ;;  %v601_v1 = vrot.slane %v438_v61, 1  ;;  %v448_v3 = vshll.u32 %v438_v61, 16 }
  0x2a   : > { %508 = vmatpush.bf16.msra.mxu0 %v2138_v52  ;;  %v445_v2 = vrot.slane %v443_v0, 1 }
  0x2b   : > { %572 = vmatmul.bf16.vlgmr.msra.gmra.mxu1 %v437_v58  ;;  %v602_v4 = vsel %vm599_vm9, %v600_v62, %v601_v1  ;;  %v450_v6 = vrot.slane %v448_v3, 1  ;;  %815 = vmatpush.bf16.msra.mxu3 %v2165_v28  ;;  %v2185_v28 = vld [vmem:[%s2757_s3 + $0x38] sm:$0xff] }
  0x2c   : > { %v446_v5 = vor.u32 %v445_v2, %v441_v63  ;;  %660 = vmatmul.bf16.vlgmr.msra.gmra.mxu2 %v602_v4  ;;  %961 = vmatpush.bf16.msrb.mxu1 %v2177_v10  ;;  %v703_v2 = vld [vmem:[#allocation2 + $0x8] sm:$0x1] }
  0x2e   : > { %v451_v7 = vsel %vm2764_vm10, %v446_v5, %v450_v6  ;;  %874 = vmatpush.bf16.msrb.mxu0 %v2161_v8 }
  0x2f   : > { %509 = vmatmul.bf16.vlgmr.msra.gmra.mxu0 %v451_v7  ;;  %816 = vmatpush.bf16.msra.mxu3 %v2164_v36  ;;  %v2193_v36 = vld [vmem:[%s2757_s3 + $0x78] sm:$0xff] }
  0x30   : > { %962 = vmatpush.bf16.msrb.mxu1 %v2176_v15  ;;  %1154 = vmatpush.bf16.msrb.mxu2 %v2193_v36 }
  0x32   : > { %875 = vmatpush.bf16.msrb.mxu0 %v2160_v9 }
  0x33   : > { %817 = vmatpush.bf16.msra.mxu3 %v2163_v42  ;;  %v2191_v42 = vld [vmem:[%s2757_s3 + $0x68] sm:$0xff] }
  0x34   : > { %963 = vmatpush.bf16.msrb.mxu1 %v2175_v19 }
  0x36   : > { %876 = vmatpush.bf16.msrb.mxu0 %v2159_v12 }
  0x37   : > { %818 = vmatpush.bf16.msra.mxu3 %v2162_v46 }
  0x38   : > { %964 = vmatpush.bf16.msrb.mxu1 %v2174_v23 }
  0x3a   : > { %877 = vmatpush.bf16.msrb.mxu0 %v2158_v17 }
  0x3b   : > { %1215 = vmatpush.bf16.msrb.mxu3 %v2185_v28 }
  0x3c   : > { %965 = vmatpush.bf16.msrb.mxu1 %v2173_v26  ;;  %v345_v26 = vld [vmem:[#allocation3] sm:$0x1] }
  0x3e   : > { %878 = vmatpush.bf16.msrb.mxu0 %v2157_v20 }
  0x40   : > { %966 = vmatpush.bf16.msrb.mxu1 %v2172_v30  ;;  %v2184_v30 = vld [vmem:[%s2757_s3 + $0x30] sm:$0xff] }
  0x41   : > { %1216 = vmatpush.bf16.msrb.mxu3 %v2184_v30 }
  0x42   : > { %879 = vmatpush.bf16.msrb.mxu0 %v2156_v24 }
  0x44   : > { %967 = vmatpush.bf16.msrb.mxu1 %v2171_v40  ;;  %v2199_v40 = vld [vmem:[%s2757_s3 + $0xa8] sm:$0xff] }
  0x46   : > { %880 = vmatpush.bf16.msrb.mxu0 %v2155_v27  ;;  %v346_v27 = vsel %vm2349_vm2, 0, %v345_v26 }
  0x47   : > { %347 = vst [vmem:[#allocation3] sm:$0x1] %v346_v27 }
  0x48   : > { %968 = vmatpush.bf16.msrb.mxu1 %v2170_v44 }
  0x4a   : > { %881 = vmatpush.bf16.msrb.mxu0 %v2154_v33  ;;  %v2201_v33 = vld [vmem:[%s2757_s3 + $0xb8] sm:$0xff] }
  0x4e   : > { %1299 = vmatpush.bf16.msra.mxu0 %v2201_v33 }
  0xa8   : > { %v573_v31 = vpop.f32.mrf.mxu1 }
  0xac   : > { %v510_v32 = vpop.f32.mrf.mxu0 }
  0xad   : > { %v574_v35 = vadd.f32 %v573_v31, %v510_v32  ;;  %v348_v31 = vld [vmem:[#allocation3 + $0x4] sm:$0x1] }
  0xae   : > { %v349_v32 = vsel %vm2368_vm5, 0, %v348_v31 }
  0xaf   : > { %v661_v38 = vpop.f32.mrf.mxu2  ;;  %350 = vst [vmem:[#allocation3 + $0x4] sm:$0x1] %v349_v32 }
  0xb0   : > { %v666_v39 = vadd.f32 %v661_v38, %v574_v35  ;;  %v575_v47 = vpop.f32.mrf.mxu1  ;;  %v2183_v35 = vld [vmem:[%s2757_s3 + $0x28] sm:$0xff]  ;;  %v2182_v38 = vld [vmem:[%s2757_s3 + $0x20] sm:$0xff] }
  0xb1   : > { %1217 = vmatpush.bf16.msrb.mxu3 %v2183_v35 }
  0xb2   : > { %v672_v41 = vadd.f32 %v2236_v37, %v666_v39  ;;  %v2192_v39 = vld [vmem:[%s2757_s3 + $0x70] sm:$0xff] }
  0xb3   : > { %1155 = vmatpush.bf16.msrb.mxu2 %v2192_v39 }
  0xb4   : > { %v512_v43 = vpop.f32.mrf.mxu0  ;;  %v674_v45 = vmax.f32 %v672_v41, 0.0  ;;  %v2181_v41 = vld [vmem:[%s2757_s3 + $0x18] sm:$0xff] }
  0xb5   : > { %v576_v49 = vadd.f32 %v575_v47, %v512_v43  ;;  %1218 = vmatpush.bf16.msrb.mxu3 %v2182_v38  ;;  %v2198_v43 = vld [vmem:[%s2757_s3 + $0xa0] sm:$0xff] }
  0xb6   : > { %v676_v48 = vadd.f32 %v674_v45, %v2353_v13  ;;  %v2180_v45 = vld [vmem:[%s2757_s3 + $0x10] sm:$0xff] }
  0xb7   : > { %v663_v51 = vpop.f32.mrf.mxu2  ;;  %1156 = vmatpush.bf16.msrb.mxu2 %v2191_v42 }
  0xb8   : > { %v678_v52 = vpack.c.bf16 %v676_v48, %v676_v48  ;;  %v667_v53 = vadd.f32 %v663_v51, %v576_v49  ;;  %v2237_v49 = vld [vmem:[%s2760_s6] ss:$0 sm:$0xff] }
  0xb9   : > { %1219 = vmatpush.bf16.msrb.mxu3 %v2181_v41  ;;  %v2190_v51 = vld [vmem:[%s2757_s3 + $0x60] sm:$0xff] }
  0xba   : > { %v681_v54 = vshrl.u32 %v678_v52, 16  ;;  %v673_v55 = vadd.f32 %v2236_v37, %v667_v53  ;;  %v684_v57 = vshll.u32 %v678_v52, 16  ;;  %v2200_v37 = vld [vmem:[%s2757_s3 + $0xb0] sm:$0xff]  ;;  %v2197_v52 = vld [vmem:[%s2757_s3 + $0x98] sm:$0xff] }
  0xbb   : > { %1300 = vmatpush.bf16.msra.mxu0 %v2200_v37  ;;  %1157 = vmatpush.bf16.msrb.mxu2 %v2190_v51 }
  0xbc   : > { %v683_v56 = vrot.slane %v681_v54, 7  ;;  %v675_v58 = vmax.f32 %v673_v55, 0.0  ;;  %v2179_v54 = vld [vmem:[%s2757_s3 + $0x8] sm:$0xff]  ;;  %v2189_v55 = vld [vmem:[%s2757_s3 + $0x58] sm:$0xff] }
  0xbd   : > { %1220 = vmatpush.bf16.msrb.mxu3 %v2180_v45 }
  0xbe   : > { %v686_v59 = vor.u32 %v684_v57, %v683_v56  ;;  %v677_v60 = vadd.f32 %v675_v58, %v2360_v16  ;;  %v687_v3 = vrot.slane %v683_v56, 4  ;;  %v2196_v57 = vld [vmem:[%s2757_s3 + $0x90] sm:$0xff]  ;;  %v2178_v58 = vld [vmem:[%s2757_s3] sm:$0xff] }
  0xbf   : > { %1301 = vmatpush.bf16.msra.mxu0 %v2199_v40  ;;  %1158 = vmatpush.bf16.msrb.mxu2 %v2189_v55 }
  0xc0   : > { %v700_v61 = vsel %vm2390_vm8, %v686_v59, %v2424_v50  ;;  %v679_v62 = vpack.c.bf16 %v677_v60, %v677_v60  ;;  %vm1006_vm8 = vmand %vm996_vm11, %vm1005_vm4  ;;  %vm1047_vm11 = vsmask.f32 7950 }
  0xc1   : > { %701 = vst [vmem:[#allocation2] sm:$0xf] %v700_v61  ;;  %1221 = vmatpush.bf16.msrb.mxu3 %v2179_v54  ;;  %v357_v54 = vld [vmem:[#allocation4 + $0x8] sm:$0x1] }
  0xc2   : > { %v689_v63 = vshrl.u32 %v679_v62, 16  ;;  %v692_v1 = vshll.u32 %v679_v62, 16  ;;  %v2188_v62 = vld [vmem:[%s2757_s3 + $0x50] sm:$0xff] }
  0xc3   : > { %1302 = vmatpush.bf16.msra.mxu0 %v2198_v43  ;;  %1159 = vmatpush.bf16.msrb.mxu2 %v2188_v62 }
  0xc4   : > { %v691_v0 = vrot.slane %v689_v63, 7 }
  0xc5   : > { %1222 = vmatpush.bf16.msrb.mxu3 %v2178_v58 }
  0xc6   : > { %v694_v4 = vor.u32 %v692_v1, %v691_v0  ;;  %v696_v5 = vrot.slane %v691_v0, 4  ;;  %v2195_v1 = vld [vmem:[%s2757_s3 + $0x88] sm:$0xff] }
  0xc7   : > { %1303 = vmatpush.bf16.msra.mxu0 %v2197_v52 }
  0xc8   : > { %v695_v6 = vsel %vm2382_vm7, %v687_v3, %v694_v4  ;;  %v704_v7 = vsel %vm2349_vm2, %v696_v5, %v703_v2  ;;  %v2223_v10 = vld [vmem:[#allocation2] sm:$0xe]  ;;  %v999_v5 = vld [vmem:[#allocation3] sm:$0x2]  ;;  %vm1040_vm7 = vsmask.f32 3328 }
  0xc9   : > { %702 = vst [vmem:[#allocation2 + $0x4] sm:$0xf] %v695_v6 }
  0xca   : > { %705 = vst [vmem:[#allocation2 + $0x8] sm:$0x1] %v704_v7 }
  0xcb   : > { %1304 = vmatpush.bf16.msra.mxu0 %v2196_v57 }
  0xcf   : > { %1305 = vmatpush.bf16.msra.mxu0 %v2195_v1  ;;  %v2209_v1 = vld [vmem:[%s2758_s4 + $0x38] sm:$0xff] }
  0xd0   : > { %v2215_v8 = vld [vmem:[#allocation2] sm:$0xff]   ;;  %1482 = vmatpush.bf16.msra.mxu1 %v2209_v1 }
  0xd1   : > { %v2222_v34 = vld [vmem:[#allocation2] sm:$0xf0]  ;;  %v753_v50 = vshll.u32 %v2215_v8, 16  ;;  %882 = vmatmul.bf16.vlgmr.msrb.gmra.mxu0 %v2215_v8  ;;  %v724_v9 = vld [vmem:[#allocation2 + $0x8] sm:$0x1]  ;;  %v751_v18 = vshrl.u32 %v2215_v8, 16 }
  0xd2   : > { %v747_v12 = vunpack.c.l.b16 %v724_v9  ;;  %v2224_v14 = vor.u32 %v2223_v10, %v2222_v34  ;;  %v2187_v8 = vld [vmem:[%s2757_s3 + $0x48] sm:$0xff]  ;;  %v2194_v34 = vld [vmem:[%s2757_s3 + $0x80] sm:$0xff] }
  0xd3   : > { %v755_v15 = vrot.slane %v753_v50, 1  ;;  %v993_v50 = vld [vmem:[#allocation3] sm:$0x1]  ;;  %v1017_v9 = vld [vmem:[#allocation3] sm:$0x4]  ;;  %1160 = vmatpush.bf16.msrb.mxu2 %v2187_v8  ;;  %1306 = vmatpush.bf16.msra.mxu0 %v2194_v34  ;;  %v2202_v8 = vld [vmem:[%s2758_s4] sm:$0xff] }
  0xd4   : > { %v749_v17 = vpack.c.b16 %v747_v12, %v747_v12  ;;  %v909_v19 = vrot.slane %v2224_v14, 1  ;;  %v2211_v34 = vld [vmem:[%s2758_s4 + $0x48] sm:$0xff] }
  0xd5   : > { %v756_v23 = vor.u32 %v755_v15, %v751_v18 }
  0xd6   : > { %v910_v20 = vrot.slane %v749_v17, 1  ;;  %v758_v29 = vshll.u32 %v749_v17, 16 }
  0xd8   : > { %v911_v21 = vsel %vm599_vm9, %v909_v19, %v910_v20  ;;  %v760_v24 = vrot.slane %v758_v29, 1  ;;  %v2186_v20 = vld [vmem:[%s2757_s3 + $0x40] sm:$0xff] }
  0xd9   : > { %969 = vmatmul.bf16.vlgmr.msrb.gmra.mxu1 %v911_v21  ;;  %1161 = vmatpush.bf16.msrb.mxu2 %v2186_v20  ;;  %v2206_v20 = vld [vmem:[%s2758_s4 + $0x20] sm:$0xff] }
  0xda   : > { %v761_v25 = vsel %vm2764_vm10, %v756_v23, %v760_v24  ;;  %v1042_v23 = vld [vmem:[#allocation3] sm:$0x8]  ;;  %v1055_v24 = vld [vmem:[#allocation3 + $0x4] sm:$0x1]  ;;  %vm1048_vm10 = vmand %vm1039_vm6, %vm1047_vm11 }
  0xdb   : > { %819 = vmatmul.bf16.vlgmr.msra.gmra.mxu3 %v761_v25 }
 0x14e   : > { %v883_v44 = vpop.f32.mrf.mxu0 }
 0x156   : > { %v970_v46 = vpop.f32.mrf.mxu1  ;;  %v885_v60 = vpop.f32.mrf.mxu0 }
 0x15e   : > { %v820_v47 = vpop.f32.mrf.mxu3  ;;  %v972_v2 = vpop.f32.mrf.mxu1 }
 0x15f   : > { %v884_v48 = vadd.f32 %v883_v44, %v820_v47 }
 0x161   : > { %v975_v53 = vadd.f32 %v970_v46, %v884_v48 }
 0x163   : > { %v2576_v56 = vadd.f32 %v2237_v49, %v975_v53  ;;  %v353_v53 = vld [vmem:[#allocation4] sm:$0x1] }
 0x165   : > { %v984_v59 = vrot.slane %v2576_v56, 1 }
 0x166   : > { %v822_v61 = vpop.f32.mrf.mxu3 }
 0x167   : > { %v986_v63 = vadd.f32 %v984_v59, %v2576_v56  ;;  %v886_v0 = vadd.f32 %v885_v60, %v822_v61  ;;  %v2205_v60 = vld [vmem:[%s2758_s4 + $0x18] sm:$0xff] }
 0x168   : > { %1522 = vmatpush.bf16.msra.mxu2 %v2205_v60 }
 0x169   : > { %v987_v3 = vmul.f32 0.5, %v986_v63  ;;  %v976_v4 = vadd.f32 %v972_v2, %v886_v0  ;;  %v2204_v63 = vld [vmem:[%s2758_s4 + $0x10] sm:$0xff]  ;;  %v2213_v0 = vld [vmem:[%s2758_s4 + $0x58] sm:$0xff]  ;;  %v2203_v2 = vld [vmem:[%s2758_s4 + $0x8] sm:$0xff] }
 0x16a   : > { %1579 = vmatpush.bf16.msra.mxu3 %v2213_v0 }
 0x16b   : > { %v988_v6 = vpack.c.bf16 %v987_v3, %v987_v3  ;;  %v2594_v7 = vadd.f32 %v2237_v49, %v976_v4  ;;  %v2212_v3 = vld [vmem:[%s2758_s4 + $0x50] sm:$0xff] }
 0x16c   : > { %1523 = vmatpush.bf16.msra.mxu2 %v2204_v63  ;;  %v2208_v4 = vld [vmem:[%s2758_s4 + $0x30] sm:$0xff] }
 0x16d   : > { %v990_v10 = vshll.u32 %v988_v6, 16  ;;  %v1000_v12 = vsel %vm998_vm15, %v988_v6, %v999_v5  ;;  %v1924_v14 = vrot.slane %v988_v6, 9  ;;  %v1021_v15 = vrot.slane %v2594_v7, 1  ;;  %vm1041_vm15 = vmand %vm1039_vm6, %vm1040_vm7  ;;  %1483 = vmatpush.bf16.msra.mxu1 %v2208_v4 }
 0x16e   : > { %1001 = vst [vmem:[#allocation3] sm:$0x2] %v1000_v12  ;;  %1580 = vmatpush.bf16.msra.mxu3 %v2212_v3  ;;  %v2238_v12 = vld [vmem:[%s2761_s7] ss:$0 sm:$0xff]  ;;  %vm1343_vm6 = vcmask 518146  }
 0x16f   : > { %v994_v17 = vsel %vm2368_vm5, %v990_v10, %v993_v50  ;;  %v1018_v18 = vsel %vm1016_vm0, %v1924_v14, %v1017_v9  ;;  %v1023_v19 = vadd.f32 %v1021_v15, %v2594_v7  ;;  %vm1031_vm5 = vsmask.f32 7946  ;;  %v2207_v9 = vld [vmem:[%s2758_s4 + $0x28] sm:$0xff] }
 0x170   : > { %995 = vst [vmem:[#allocation3] sm:$0x1] %v994_v17  ;;  %v1923_v21 = vrot.slane %v990_v10, 9  ;;  %vm1032_vm0 = vmand %vm1014_vm13, %vm1031_vm5  ;;  %1524 = vmatpush.bf16.msra.mxu2 %v2203_v2  ;;  %v2210_v17 = vld [vmem:[%s2758_s4 + $0x40] sm:$0xff] }
 0x171   : > { %1019 = vst [vmem:[#allocation3] sm:$0x4] %v1018_v18  ;;  %v1024_v29 = vmul.f32 0.5, %v1023_v19  ;;  %1484 = vmatpush.bf16.msra.mxu1 %v2207_v9 }
 0x172   : > { %1581 = vmatpush.bf16.msra.mxu3 %v2211_v34 }
 0x173   : > { %v1025_v22 = vpack.c.bf16 %v1024_v29, %v1024_v29 }
 0x174   : > { %1525 = vmatpush.bf16.msra.mxu2 %v2202_v8 }
 0x175   : > { %v1007_v25 = vld [vmem:[#allocation3] sm:$0x2]  ;;  %v1027_v26 = vshll.u32 %v1025_v22, 16  ;;  %v1037_v27 = vrot.slane %v1025_v22, 6  ;;  %v1925_v28 = vrot.slane %v1025_v22, 11  ;;  %1485 = vmatpush.bf16.msra.mxu1 %v2206_v20 }
 0x176   : > { %v1008_v30 = vsel %vm1006_vm8, %v1923_v21, %v1007_v25  ;;  %1582 = vmatpush.bf16.msra.mxu3 %v2210_v17  ;;  %v1398_v21 = vld [vmem:[#allocation4 + $0x4] sm:$0x8]  ;;  %v1332_v25 = vld [vmem:[#allocation4] sm:$0x2] }
 0x177   : > { %1009 = vst [vmem:[#allocation3] sm:$0x2] %v1008_v30  ;;  %v1029_v31 = vrot.slane %v1027_v26, 6  ;;  %v1043_v32 = vsel %vm1041_vm15, %v1037_v27, %v1042_v23  ;;  %v1056_v33 = vsel %vm2349_vm2, %v1925_v28, %v1055_v24  ;;  %v1045_v37 = vrot.slane %v1027_v26, 7 }
 0x178   : > { %v1033_v35 = vld [vmem:[#allocation3] sm:$0x4]  ;;  %1044 = vst [vmem:[#allocation3] sm:$0x8] %v1043_v32  ;;  %vm351_vm2 = vcmask 516096  }
 0x179   : > { %v1034_v36 = vsel %vm1032_vm0, %v1029_v31, %v1033_v35  ;;  %1057 = vst [vmem:[#allocation3 + $0x4] sm:$0x1] %v1056_v33  ;;  %vm2629_vm13 = vmand %vm351_vm2, %vm340_vm3  ;;  %vm1330_vm3 = vcmask 517121   ;;  %v1358_v31 = vld [vmem:[#allocation4] sm:$0x8] }
 0x17a   : > { %1035 = vst [vmem:[#allocation3] sm:$0x4] %v1034_v36  ;;  %v358_v59 = vsel %vm2629_vm13, 0, %v357_v54  ;;  %vm2682_vm15 = vmand %vm1330_vm3, %vm997_vm12  ;;  %v1380_v35 = vld [vmem:[#allocation4 + $0x4] sm:$0x2] }
 0x17b   : > { %359 = vst [vmem:[#allocation4 + $0x8] sm:$0x1] %v358_v59  ;;  %v1389_v36 = vld [vmem:[#allocation4 + $0x4] sm:$0x4]  ;;  %vm2720_vm0 = vmand %vm1343_vm6, %vm1031_vm5  ;;  %vm2787_vm5 = vsmask.f32 7424 }
 0x17f   : > { %v1049_v38 = vld [vmem:[#allocation3] sm:$0x8] }
 0x180   : > { %v1050_v39 = vsel %vm1048_vm10, %v1045_v37, %v1049_v38  ;;  %v1075_v40 = vld [vmem:[#allocation3 + $0x4] sm:$0x1]  ;;  %vm2622_vm10 = vmand %vm351_vm2, %vm335_vm1  ;;  %vm1356_vm1 = vcmask 519171  }
 0x181   : > { %1051 = vst [vmem:[#allocation3] sm:$0x8] %v1050_v39  ;;  %v1096_v44 = vunpack.c.l.b16 %v1075_v40  ;;  %v354_v57 = vsel %vm2622_vm10, 0, %v353_v53  ;;  %vm2676_vm8 = vmand %vm1356_vm1, %vm1040_vm7 }
 0x182   : > { %355 = vst [vmem:[#allocation4] sm:$0x1] %v354_v57  ;;  %vm2688_vm7 = vmand %vm1343_vm6, %vm1015_vm14  ;;  %v1407_v40 = vld [vmem:[#allocation4 + $0x8] sm:$0x1] }
 0x183   : > { %vm1361_vm12 = vmand %vm1356_vm1, %vm1047_vm11 }
 0x184   : > { %vm2714_vm14 = vmand %vm1330_vm3, %vm1005_vm4  ;;  %vm1474_vm4 = vcmask 523264  }
 0x188   : > { %v1058_v41 = vld [vmem:[#allocation3] sm:$0xf] }
 0x189   : > { %v1228_v42 = vld [vmem:[#allocation3] sm:$0xe]  ;;  %v1095_v43 = vunpack.c.l.b16 %v1058_v41  ;;  %1223 = vmatmul.bf16.vlgmr.msrb.gmra.mxu3 %v1058_v41  ;;  %v1324_v24 = vld [vmem:[#allocation4] sm:$0x1] }
 0x18a   : > { %v1247_v11 = vunpack.c.l.b16 %v1228_v42 }
 0x18b   : > { %v1097_v45 = vpack.c.b16 %v1096_v44, %v1095_v43 }
 0x18c   : > { %v1248_v46 = vpack.c.b16 %v1096_v44, %v1247_v11  ;;  %v1345_v44 = vld [vmem:[#allocation4] sm:$0x4] }
 0x18d   : > { %v1101_v48 = vshll.u32 %v1097_v45, 16  ;;  %v1099_v49 = vshrl.u32 %v1097_v45, 16 }
 0x18e   : > { %v1249_v47 = vrot.slane %v1248_v46, 1 }
 0x18f   : > { %v1103_v51 = vrot.slane %v1101_v48, 1 }
 0x190   : > { %1307 = vmatmul.bf16.vlgmr.msra.gmra.mxu0 %v1249_v47  ;;  %v1368_v47 = vld [vmem:[#allocation4 + $0x4] sm:$0x1] }
 0x191   : > { %v1104_v52 = vor.u32 %v1103_v51, %v1099_v49 }
 0x193   : > { %1162 = vmatmul.bf16.vlgmr.msrb.gmra.mxu2 %v1104_v52 }
 0x20c   : > { %v1224_v61 = vpop.f32.mrf.mxu3 }
 0x20d   : > { %v1308_v62 = vpop.f32.mrf.mxu0 }
 0x214   : > { %v1226_v5 = vpop.f32.mrf.mxu3 }
 0x215   : > { %v1310_v6 = vpop.f32.mrf.mxu0 }
 0x216   : > { %v1163_v50 = vpop.f32.mrf.mxu2 }
 0x217   : > { %v1225_v10 = vadd.f32 %v1224_v61, %v1163_v50 }
 0x219   : > { %v1312_v14 = vadd.f32 %v1308_v62, %v1225_v10 }
 0x21b   : > { %v1317_v15 = vadd.f32 %v2238_v12, %v1312_v14 }
 0x21d   : > { %v1318_v18 = vmax.f32 %v1317_v15, 0.0 }
 0x21e   : > { %v1165_v19 = vpop.f32.mrf.mxu2 }
 0x21f   : > { %v1319_v22 = vpack.c.bf16 %v1318_v18, %v1318_v18 }
 0x221   : > { %v1321_v26 = vshll.u32 %v1319_v22, 16  ;;  %v1328_v27 = vrot.slane %v1319_v22, 7  ;;  %v1339_v28 = vshrl.u32 %v1319_v22, 16  ;;  %v1354_v30 = vrot.slane %v1319_v22, 6 }
 0x222   : > { %v1377_v33 = vrot.slane %v1319_v22, 5  ;;  %v1399_v37 = vsel %vm2676_vm8, %v1319_v22, %v1398_v21 }
 0x223   : > { %v1333_v38 = vsel %vm2682_vm15, %v1328_v27, %v1332_v25  ;;  %v1341_v39 = vrot.slane %v1339_v28, 6  ;;  %1400 = vst [vmem:[#allocation4 + $0x4] sm:$0x8] %v1399_v37  ;;  %v1359_v41 = vsel %vm2676_vm8, %v1354_v30, %v1358_v31  ;;  %v2054_v42 = vrot.slane %v1339_v28, 9  ;;  %v2239_v31 = vld [vmem:[%s2762_s8] ss:$0 sm:$0xff] }
 0x224   : > { %1334 = vst [vmem:[#allocation4] sm:$0x2] %v1333_v38  ;;  %v1378_v43 = vrot.slane %v1377_v33, 4  ;;  %v1325_v11 = vsel %vm2629_vm13, %v1321_v26, %v1324_v24  ;;  %v1390_v45 = vsel %vm2688_vm7, %v1339_v28, %v1389_v36  ;;  %v2058_v46 = vrot.slane %v1339_v28, 11 }
 0x225   : > { %1360 = vst [vmem:[#allocation4] sm:$0x8] %v1359_v41  ;;  %v1346_v51 = vsel %vm2688_vm7, %v1341_v39, %v1345_v44  ;;  %v1369_v52 = vsel %vm2622_vm10, %v2054_v42, %v1368_v47  ;;  %v2057_v62 = vrot.slane %v1321_v26, 9  ;;  %v1348_v4 = vrot.slane %v1321_v26, 7 }
 0x226   : > { %v1381_v48 = vsel %vm2682_vm15, %v1378_v43, %v1380_v35  ;;  %1391 = vst [vmem:[#allocation4 + $0x4] sm:$0x4] %v1390_v45  ;;  %v1408_v49 = vsel %vm2622_vm10, %v2058_v46, %v1407_v40  ;;  %v2055_v5 = vrot.slane %v1321_v26, 10 }
 0x227   : > { %1382 = vst [vmem:[#allocation4 + $0x4] sm:$0x2] %v1381_v48 }
 0x228   : > { %1326 = vst [vmem:[#allocation4] sm:$0x1] %v1325_v11 }
 0x229   : > { %1409 = vst [vmem:[#allocation4 + $0x8] sm:$0x1] %v1408_v49 }
 0x22a   : > { %v1401_v54 = vld [vmem:[#allocation4 + $0x4] sm:$0x8]  ;;  %1347 = vst [vmem:[#allocation4] sm:$0x4] %v1346_v51 }
 0x22b   : > { %v1336_v59 = vld [vmem:[#allocation4] sm:$0x2]  ;;  %v1402_v60 = vsel %vm1361_vm12, %v1319_v22, %v1401_v54  ;;  %1370 = vst [vmem:[#allocation4 + $0x4] sm:$0x1] %v1369_v52 }
 0x22c   : > { %v1337_v55 = vsel %vm2714_vm14, %v1328_v27, %v1336_v59  ;;  %v1362_v61 = vld [vmem:[#allocation4] sm:$0x8]  ;;  %1403 = vst [vmem:[#allocation4 + $0x4] sm:$0x8] %v1402_v60 }
 0x22d   : > { %v1363_v63 = vsel %vm1361_vm12, %v1354_v30, %v1362_v61  ;;  %1338 = vst [vmem:[#allocation4] sm:$0x2] %v1337_v55  ;;  %v1395_v0 = vld [vmem:[#allocation4 + $0x4] sm:$0x4] }
 0x22e   : > { %v1383_v1 = vld [vmem:[#allocation4 + $0x4] sm:$0x2]  ;;  %1364 = vst [vmem:[#allocation4] sm:$0x8] %v1363_v63  ;;  %v1396_v2 = vsel %vm2720_vm0, %v2057_v62, %v1395_v0 }
 0x22f   : > { %v1384_v3 = vsel %vm2714_vm14, %v1378_v43, %v1383_v1  ;;  %1397 = vst [vmem:[#allocation4 + $0x4] sm:$0x4] %v1396_v2 }
 0x230   : > { %1385 = vst [vmem:[#allocation4 + $0x4] sm:$0x2] %v1384_v3  ;;  %v1420_v8 = vld [vmem:[#allocation4 + $0x8] sm:$0x1] }
 0x231   : > { %v1351_v6 = vld [vmem:[#allocation4] sm:$0x4]  ;;  %v1435_v10 = vunpack.c.l.b16 %v1420_v8 }
 0x232   : > { %v1352_v34 = vsel %vm2720_vm0, %v1348_v4, %v1351_v6  ;;  %v1374_v50 = vld [vmem:[#allocation4 + $0x4] sm:$0x1] }
 0x233   : > { %1353 = vst [vmem:[#allocation4] sm:$0x4] %v1352_v34  ;;  %v1375_v9 = vsel %vm2629_vm13, %v2055_v5, %v1374_v50  ;;  %v1437_v12 = vpack.c.b16 %v1435_v10, %v1435_v10 }
 0x234   : > { %1376 = vst [vmem:[#allocation4 + $0x4] sm:$0x1] %v1375_v9 }
 0x235   : > { %v1446_v20 = vshll.u32 %v1437_v12, 16  ;;  %v1546_v23 = vrot.slane %v1437_v12, 1 }
 0x237   : > { %v1448_v25 = vrot.slane %v1446_v20, 1 }
 0x23a   : > { %v2226_v14 = vld [vmem:[#allocation4] sm:$0xe] }
 0x23b   : > { %v2219_v15 = vld [vmem:[#allocation4] sm:$0xff]  }
 0x23c   : > { %v2225_v17 = vld [vmem:[#allocation4] sm:$0xf0]  ;;  %v1441_v18 = vshll.u32 %v2219_v15, 16  ;;  %2100 = vmatmul.msk.bf16.vlgmr.msra.gmra.mxu2 %vm1474_vm4, %v2219_v15  ;;  %v1439_v29 = vshrl.u32 %v2219_v15, 16 }
 0x23d   : > { %v2227_v19 = vor.u32 %v2226_v14, %v2225_v17 }
 0x23e   : > { %v1443_v22 = vrot.slane %v1441_v18, 1 }
 0x23f   : > { %v1545_v21 = vrot.slane %v2227_v19, 1 }
 0x240   : > { %v1444_v24 = vor.u32 %v1443_v22, %v1439_v29 }
 0x241   : > { %v1547_v58 = vsel %vm599_vm9, %v1545_v21, %v1546_v23 }
 0x242   : > { %2125 = vmatmul.msk.bf16.vlgmr.msra.gmra.mxu3 %vm1474_vm4, %v1547_v58  ;;  %v1449_v26 = vsel %vm2787_vm5, %v1444_v24, %v1448_v25 }
 0x243   : > { %2083 = vmatmul.msk.bf16.vlgmr.msra.gmra.mxu1 %vm1474_vm4, %v1449_v26 }
 0x2bf   : > { %v1527_v27 = vpop.f32.mrf.mxu2 }
 0x2c0   : > { %v1487_v28 = vpop.f32.mrf.mxu1 }
 0x2c1   : > { %v1528_v30 = vadd.f32 %v1527_v27, %v1487_v28 }
 0x2c5   : > { %v1584_v32 = vpop.f32.mrf.mxu3 }
 0x2c6   : > { %v1589_v33 = vadd.f32 %v1584_v32, %v1528_v30 }
 0x2c7   : > { %v1529_v36 = vpop.f32.mrf.mxu2 }
 0x2c8   : > { %v1595_v35 = vadd.f32 %v2239_v31, %v1589_v33  ;;  %v1489_v37 = vpop.f32.mrf.mxu1 }
 0x2c9   : > { %v1530_v40 = vadd.f32 %v1529_v36, %v1489_v37 }
 0x2ca   : > { %v1597_v38 = vadd.f32 %v1595_v35, %v2576_v56 }
 0x2cc   : > { %v1599_v39 = vadd.f32 %v1597_v38, %v2353_v13 }
 0x2cd   : > { %v1586_v41 = vpop.f32.mrf.mxu3 }
 0x2ce   : > { %1601 = vst [vmem:[%s332_s12] sm:$0xff] %v1599_v39  ;;  %v1590_v42 = vadd.f32 %v1586_v41, %v1530_v40 }
 0x2d0   : > { %v1596_v43 = vadd.f32 %v2239_v31, %v1590_v42 }
 0x2d2   : > { %v1598_v44 = vadd.f32 %v1596_v43, %v2594_v7 }
 0x2d4   : > { %v1600_v11 = vadd.f32 %v1598_v44, %v2360_v16 }
 0x2d6   : > { %1602 = vst [vmem:[%s332_s12 + $0x8] sm:$0xff] %v1600_v11 }
 0x2d7 PF: > { %s19_s30 = sadd.s32 1, %s2246_s30  }
 0x2d8   : > { %p16_p4 = scmp.ge.s32.totalorder %s19_s30, 4  }
 0x2da   :  { %18 = sbr.rel (!%p16_p4) target bundleno = 1 (0x1), region = 94 }

</bundles_post_ra>
